<compile_context>
chip_gen: v7x
topology: tpu7x:2x2x1
jax: 0.10.0
libtpu: 0.0.40
codegen_flags: <defaults>
</compile_context>

<pallas_src>
import math

import numpy as np
import jax
import jax.numpy as jnp
from jax.experimental import pallas as pl
from jax.experimental.pallas import tpu as pltpu

# ----- model hyper-parameters (small test sizes consistent with the module) -----
B = 2            # batch
L = 16           # sequence length ("length")
D = 32           # model_dim
CONV_LAYERS = 2  # conv_layer_num
K = 7            # depthwise conv kernel size (QANet DepthwiseSeparableConv default)
PAD = K // 2
NUM_HEADS = 4    # TODO(synk): layers.MHA head count not given in the snippet; using 4 heads.
HEAD_DIM = D // NUM_HEADS
EPS = 1e-5
NEG_INF = -1e30
BL = B * L

# ----- packed-parameter layout -----
# `mats` (D, MATS_COLS): [ Wq*scale | Wk | Wv | Wo | pw_w[0..] | ffn_w1 | ffn_w2 ]
C_QKV = 0
C_WO = 3 * D
C_PW = 4 * D                       # + i*D for conv layer i
C_FFN = (4 + CONV_LAYERS) * D      # + j*D for ffn layer j
MATS_COLS = (6 + CONV_LAYERS) * D  # = 256 for CONV_LAYERS=2

# `vecs` (VEC_ROWS, D): per-row vectors
R_LNG = 0                          # CONV_LAYERS+2 rows of layernorm gamma
R_LNB = R_LNG + CONV_LAYERS + 2    # CONV_LAYERS+2 rows of layernorm beta
R_DW = R_LNB + CONV_LAYERS + 2     # CONV_LAYERS*K depthwise taps
R_PWB = R_DW + CONV_LAYERS * K     # CONV_LAYERS pointwise biases
R_BQ = R_PWB + CONV_LAYERS
R_BK = R_BQ + 1
R_BV = R_BK + 1
R_BO = R_BV + 1
R_BFFN = R_BO + 1                  # 2 rows
VEC_ROWS = R_BFFN + 2              # = 30 for CONV_LAYERS=2


def timing_signal(length, channels, min_timescale=1.0, max_timescale=1.0e4):
    """Tensor2Tensor-style sinusoidal signal used by QANet's PosEncoder."""
    position = jnp.arange(length, dtype=jnp.float32)
    num_timescales = channels // 2
    log_inc = math.log(float(max_timescale) / float(min_timescale)) / max(float(num_timescales) - 1.0, 1.0)
    inv_timescales = min_timescale * jnp.exp(
        jnp.arange(num_timescales, dtype=jnp.float32) * -log_inc)
    scaled_time = position[:, None] * inv_timescales[None, :]
    return jnp.concatenate([jnp.sin(scaled_time), jnp.cos(scaled_time)], axis=1)  # (L, D)


def _layer_norm(h, gamma, beta):
    mean = jnp.mean(h, axis=-1, keepdims=True)
    var = jnp.mean((h - mean) ** 2, axis=-1, keepdims=True)
    return (h - mean) * jax.lax.rsqrt(var + EPS) * gamma + beta


# ----------------------------- Pallas kernel -----------------------------
def encoder_block_kernel(x_ref, mask_ref, pos_ref, mats_ref, vecs_ref, out_ref, ctx_ref):
    # x_ref / pos_ref / out_ref / ctx_ref : (B*L, D); mask_ref: (B, L)
    def vrow(r):
        return vecs_ref[r:r + 1, :]          # (1, D) parameter row

    # PosEncoder(x.transpose(1,2)).transpose(1,2)  ==  x + sinusoid signal
    out = x_ref[...] + pos_ref[...]          # (BL, D)

    # per-row position within its batch element (for conv edge masking); hoisted
    lrow = jax.lax.broadcasted_iota(jnp.int32, (BL, 1), 0) % L
    edge_valid = {}
    for k in range(K):
        d = k - PAD
        if d > 0:
            edge_valid[d] = (lrow + d) < L
        elif d < 0:
            edge_valid[d] = (lrow + d) >= 0

    # ----- depthwise separable conv stack (layernorm -> dw conv -> pw conv -> relu -> +res) -----
    for i in range(CONV_LAYERS):
        res = out
        h = _layer_norm(out, vrow(R_LNG + i), vrow(R_LNB + i))
        # F.dropout at eval / drop_prob == 0 -> identity
        acc = jnp.zeros((BL, D), jnp.float32)
        for k in range(K):                   # 'same' conv along L via XLU roll + edge mask
            d = k - PAD
            w_row = vrow(R_DW + i * K + k)   # (1, D) depthwise tap (per channel)
            if d == 0:
                tap = h
            else:
                tap = pltpu.roll(h, shift=(-d) % BL, axis=0)   # tap[r] = h[r + d]
                tap = jnp.where(edge_valid[d], tap, 0.0)       # zero-pad + batch boundary
            acc = acc + tap * w_row
        h = jnp.dot(acc, mats_ref[:, C_PW + i * D:C_PW + (i + 1) * D],
                    preferred_element_type=jnp.float32)
        h = jnp.maximum(h + vrow(R_PWB + i), 0.0)              # relu of DepthwiseSeparableConv
        out = h + res                                          # layer_dropout(p=0) + residual

    # ----- multi-head self-attention (fused QKV + fused output projection) -----
    res = out
    h = _layer_norm(out, vrow(R_LNG + CONV_LAYERS), vrow(R_LNB + CONV_LAYERS))
    qkv = jnp.dot(h, mats_ref[:, C_QKV:C_QKV + 3 * D],
                  preferred_element_type=jnp.float32)          # (BL, 3D); Wq pre-scaled
    q_all = qkv[:, 0:D] + vrow(R_BQ)                           # bq pre-scaled in wrapper
    k_all = qkv[:, D:2 * D] + vrow(R_BK)
    v_all = qkv[:, 2 * D:3 * D] + vrow(R_BV)

    for b in range(B):                                         # mask differs per batch
        key_bias = (1.0 - mask_ref[b:b + 1, :]) * NEG_INF      # (1, L)
        r0 = b * L
        for hh in range(NUM_HEADS):
            c0 = hh * HEAD_DIM
            qh = q_all[r0:r0 + L, c0:c0 + HEAD_DIM]            # (L, HEAD_DIM)
            kh = k_all[r0:r0 + L, c0:c0 + HEAD_DIM]
            vh = v_all[r0:r0 + L, c0:c0 + HEAD_DIM]
            s = jax.lax.dot_general(qh, kh, (((1,), (1,)), ((), ())),
                                    preferred_element_type=jnp.float32) + key_bias
            m = jnp.max(s, axis=-1, keepdims=True)
            e = jnp.exp(s - m)
            p = e * pl.reciprocal(jnp.sum(e, axis=-1, keepdims=True), approx=True)
            ctx_ref[r0:r0 + L, c0:c0 + HEAD_DIM] = jnp.dot(
                p, vh, preferred_element_type=jnp.float32)

    att = jnp.dot(ctx_ref[...], mats_ref[:, C_WO:C_WO + D],
                  preferred_element_type=jnp.float32) + vrow(R_BO)
    out = att + res                                            # layer_dropout(p=0) + residual

    # ----- position-wise feed forward: fc1 (1x1 conv + relu), fc2 (1x1 conv) -----
    res = out
    h = _layer_norm(out, vrow(R_LNG + CONV_LAYERS + 1), vrow(R_LNB + CONV_LAYERS + 1))
    h = jnp.maximum(jnp.dot(h, mats_ref[:, C_FFN:C_FFN + D],
                            preferred_element_type=jnp.float32) + vrow(R_BFFN), 0.0)
    h = jnp.dot(h, mats_ref[:, C_FFN + D:C_FFN + 2 * D],
                preferred_element_type=jnp.float32) + vrow(R_BFFN + 1)
    out_ref[...] = h + res


def qanet_encoder_block(x, mask, pos, ln_g, ln_b, dw_w, pw_w, pw_b,
                        wq, wk, wv, bq, bk, bv, wo, bo, w_ffn, b_ffn):
    scale = 1.0 / math.sqrt(HEAD_DIM)

    # pack all weight matrices along lanes -> one DMA stream (D, 8*D)
    mats = jnp.concatenate(
        [wq * scale, wk, wv, wo]
        + [pw_w[i] for i in range(CONV_LAYERS)]
        + [w_ffn[0], w_ffn[1]], axis=1)                    # (D, MATS_COLS)

    # pack all per-feature vectors along rows -> one DMA stream (VEC_ROWS, D)
    vecs = jnp.concatenate(
        [ln_g, ln_b, dw_w.reshape(CONV_LAYERS * K, D), pw_b,
         (bq * scale)[None, :], bk[None, :], bv[None, :], bo[None, :], b_ffn],
        axis=0)                                            # (VEC_ROWS, D)

    x2 = x.reshape(BL, D)                                  # fold batch into sublanes
    pos2 = jnp.tile(pos, (B, 1))                           # (BL, D)
    mask2 = mask.reshape(B, L)

    out = pl.pallas_call(
        encoder_block_kernel,
        out_shape=jax.ShapeDtypeStruct((BL, D), jnp.float32),
        scratch_shapes=[pltpu.VMEM((BL, D), jnp.float32)],  # per-head context assembly
    )(x2, mask2, pos2, mats, vecs)
    return out.reshape(B, L, D)


# ------------------------- pure-JAX reference -------------------------
def reference_forward(x, mask, pos, ln_g, ln_b, dw_w, pw_w, pw_b,
                      wq, wk, wv, bq, bk, bv, wo, bo, w_ffn, b_ffn):
    def ln(h, g, b):
        mu = jnp.mean(h, -1, keepdims=True)
        var = jnp.mean((h - mu) ** 2, -1, keepdims=True)
        return (h - mu) * jax.lax.rsqrt(var + EPS) * g + b

    out = x + pos[None]
    for i in range(CONV_LAYERS):
        res = out
        h = ln(out, ln_g[i], ln_b[i])
        hp = jnp.pad(h, ((0, 0), (PAD, PAD), (0, 0)))
        acc = sum(hp[:, k:k + L, :] * dw_w[i, k][None, None, :] for k in range(K))
        h = jnp.maximum(jnp.einsum('bld,de->ble', acc, pw_w[i]) + pw_b[i], 0.0)
        out = h + res

    res = out
    h = ln(out, ln_g[CONV_LAYERS], ln_b[CONV_LAYERS])
    q = jnp.einsum('bld,de->ble', h, wq) + bq
    k_ = jnp.einsum('bld,de->ble', h, wk) + bk
    v = jnp.einsum('bld,de->ble', h, wv) + bv
    qh = q.reshape(B, L, NUM_HEADS, HEAD_DIM).transpose(0, 2, 1, 3)
    kh = k_.reshape(B, L, NUM_HEADS, HEAD_DIM).transpose(0, 2, 1, 3)
    vh = v.reshape(B, L, NUM_HEADS, HEAD_DIM).transpose(0, 2, 1, 3)
    s = jnp.einsum('bhqe,bhke->bhqk', qh, kh) / math.sqrt(HEAD_DIM) \
        + (1.0 - mask)[:, None, :, :] * NEG_INF
    p = jax.nn.softmax(s, axis=-1)
    c = jnp.einsum('bhqk,bhke->bhqe', p, vh).transpose(0, 2, 1, 3).reshape(B, L, D)
    att = jnp.einsum('bld,de->ble', c, wo) + bo
    out = att + res

    res = out
    h = ln(out, ln_g[CONV_LAYERS + 1], ln_b[CONV_LAYERS + 1])
    h = jnp.maximum(jnp.einsum('bld,de->ble', h, w_ffn[0]) + b_ffn[0], 0.0)
    h = jnp.einsum('bld,de->ble', h, w_ffn[1]) + b_ffn[1]
    return h + res


if __name__ == "__main__":
    key = jax.random.PRNGKey(0)
    ks = jax.random.split(key, 16)
    s = 0.1

    x = jax.random.normal(ks[0], (B, L, D), jnp.float32)
    lengths = jnp.array([L, L - 4])
    mask = (jnp.arange(L)[None, None, :] < lengths[:, None, None]).astype(jnp.float32)  # (B, 1, L)
    pos = timing_signal(L, D).astype(jnp.float32)

    # conv stack params (depthwise bias-free, pointwise with bias, as in QANet)
    dw_w = jax.random.normal(ks[1], (CONV_LAYERS, K, D), jnp.float32) * s
    pw_w = jax.random.normal(ks[2], (CONV_LAYERS, D, D), jnp.float32) * s
    pw_b = jax.random.normal(ks[3], (CONV_LAYERS, D), jnp.float32) * s
    # layer norms: [conv_0 .. conv_{n-1}, att, forward]  (PyTorch default init)
    ln_g = jnp.ones((CONV_LAYERS + 2, D), jnp.float32)
    ln_b = jnp.zeros((CONV_LAYERS + 2, D), jnp.float32)
    # attention params
    wq = jax.random.normal(ks[4], (D, D), jnp.float32) * s
    wk = jax.random.normal(ks[5], (D, D), jnp.float32) * s
    wv = jax.random.normal(ks[6], (D, D), jnp.float32) * s
    wo = jax.random.normal(ks[7], (D, D), jnp.float32) * s
    bq = jax.random.normal(ks[8], (D,), jnp.float32) * s
    bk = jax.random.normal(ks[9], (D,), jnp.float32) * s
    bv = jax.random.normal(ks[10], (D,), jnp.float32) * s
    bo = jax.random.normal(ks[11], (D,), jnp.float32) * s
    # feed-forward (fc1 relu, fc2)
    w_ffn = jax.random.normal(ks[12], (2, D, D), jnp.float32) * s
    b_ffn = jax.random.normal(ks[13], (2, D), jnp.float32) * s

    args = (x, mask, pos, ln_g, ln_b, dw_w, pw_w, pw_b,
            wq, wk, wv, bq, bk, bv, wo, bo, w_ffn, b_ffn)

    run = jax.jit(qanet_encoder_block)
    out = run(*args)
    jax.block_until_ready(out)

    ref = reference_forward(*args)
    np.testing.assert_allclose(np.asarray(out), np.asarray(ref), atol=2e-2, rtol=2e-2)

    print("KERNEL_OK")
</pallas_src>

<mosaic_0001>
module attributes {stable_mosaic.version = 11 : i64} {
  func.func @encoder_block_kernel(%arg0: memref<32x32xf32, #tpu.memory_space<vmem>>, %arg1: memref<2x16xf32, #tpu.memory_space<vmem>>, %arg2: memref<32x32xf32, #tpu.memory_space<vmem>>, %arg3: memref<32x256xf32, #tpu.memory_space<vmem>>, %arg4: memref<30x32xf32, #tpu.memory_space<vmem>>, %arg5: memref<32x32xf32, #tpu.memory_space<vmem>>, %arg6: memref<32x32xf32, #tpu.memory_space<vmem>>) attributes {dimension_semantics = [], scalar_prefetch = 0 : i64, scratch_operands = 1 : i64, tpu.core_type = #tpu.core_type<tc>} {
    %c0 = arith.constant 0 : index
    %c0_0 = arith.constant 0 : index
    %0 = vector.load %arg0[%c0, %c0_0] : memref<32x32xf32, #tpu.memory_space<vmem>>, vector<32x32xf32>
    %c0_1 = arith.constant 0 : index
    %c0_2 = arith.constant 0 : index
    %1 = vector.load %arg2[%c0_1, %c0_2] : memref<32x32xf32, #tpu.memory_space<vmem>>, vector<32x32xf32>
    %2 = arith.addf %0, %1 : vector<32x32xf32>
    %3 = tpu.iota {dimensions = array<i32: 0>} : vector<32x1xi32>
    %c16_i32 = arith.constant 16 : i32
    %c0_i32 = arith.constant 0 : i32
    %4 = arith.cmpi eq, %c16_i32, %c0_i32 : i32
    %c1_i32 = arith.constant 1 : i32
    %5 = arith.select %4, %c1_i32, %c16_i32 : i32
    %6 = vector.broadcast %5 : i32 to vector<32x1xi32>
    %7 = arith.remsi %3, %6 : vector<32x1xi32>
    %c0_i32_3 = arith.constant 0 : i32
    %8 = vector.broadcast %c0_i32_3 : i32 to vector<32x1xi32>
    %9 = arith.cmpi ne, %7, %8 : vector<32x1xi32>
    %c0_i32_4 = arith.constant 0 : i32
    %10 = vector.broadcast %c0_i32_4 : i32 to vector<32x1xi32>
    %11 = arith.cmpi slt, %7, %10 : vector<32x1xi32>
    %c0_i32_5 = arith.constant 0 : i32
    %12 = arith.cmpi slt, %5, %c0_i32_5 : i32
    %13 = vector.broadcast %12 : i1 to vector<32x1xi1>
    %14 = vector.broadcast %13 : vector<32x1xi1> to vector<32x1xi1>
    %15 = arith.xori %11, %14 : vector<32x1xi1>
    %16 = arith.andi %15, %9 : vector<32x1xi1>
    %17 = vector.broadcast %5 : i32 to vector<32x1xi32>
    %18 = arith.addi %7, %17 : vector<32x1xi32>
    %19 = arith.select %16, %18, %7 : vector<32x1xi1>, vector<32x1xi32>
    %c-3_i32 = arith.constant -3 : i32
    %20 = vector.broadcast %c-3_i32 : i32 to vector<32x1xi32>
    %21 = arith.addi %19, %20 : vector<32x1xi32>
    %c0_i32_6 = arith.constant 0 : i32
    %22 = vector.broadcast %c0_i32_6 : i32 to vector<32x1xi32>
    %23 = arith.cmpi sge, %21, %22 : vector<32x1xi32>
    %c-2_i32 = arith.constant -2 : i32
    %24 = vector.broadcast %c-2_i32 : i32 to vector<32x1xi32>
    %25 = arith.addi %19, %24 : vector<32x1xi32>
    %c0_i32_7 = arith.constant 0 : i32
    %26 = vector.broadcast %c0_i32_7 : i32 to vector<32x1xi32>
    %27 = arith.cmpi sge, %25, %26 : vector<32x1xi32>
    %c-1_i32 = arith.constant -1 : i32
    %28 = vector.broadcast %c-1_i32 : i32 to vector<32x1xi32>
    %29 = arith.addi %19, %28 : vector<32x1xi32>
    %c0_i32_8 = arith.constant 0 : i32
    %30 = vector.broadcast %c0_i32_8 : i32 to vector<32x1xi32>
    %31 = arith.cmpi sge, %29, %30 : vector<32x1xi32>
    %c1_i32_9 = arith.constant 1 : i32
    %32 = vector.broadcast %c1_i32_9 : i32 to vector<32x1xi32>
    %33 = arith.addi %19, %32 : vector<32x1xi32>
    %c16_i32_10 = arith.constant 16 : i32
    %34 = vector.broadcast %c16_i32_10 : i32 to vector<32x1xi32>
    %35 = arith.cmpi slt, %33, %34 : vector<32x1xi32>
    %c2_i32 = arith.constant 2 : i32
    %36 = vector.broadcast %c2_i32 : i32 to vector<32x1xi32>
    %37 = arith.addi %19, %36 : vector<32x1xi32>
    %c16_i32_11 = arith.constant 16 : i32
    %38 = vector.broadcast %c16_i32_11 : i32 to vector<32x1xi32>
    %39 = arith.cmpi slt, %37, %38 : vector<32x1xi32>
    %c3_i32 = arith.constant 3 : i32
    %40 = vector.broadcast %c3_i32 : i32 to vector<32x1xi32>
    %41 = arith.addi %19, %40 : vector<32x1xi32>
    %c16_i32_12 = arith.constant 16 : i32
    %42 = vector.broadcast %c16_i32_12 : i32 to vector<32x1xi32>
    %43 = arith.cmpi slt, %41, %42 : vector<32x1xi32>
    %c0_13 = arith.constant 0 : index
    %c0_14 = arith.constant 0 : index
    %44 = vector.load %arg4[%c0_13, %c0_14] : memref<30x32xf32, #tpu.memory_space<vmem>>, vector<1x32xf32>
    %c4 = arith.constant 4 : index
    %c0_15 = arith.constant 0 : index
    %45 = vector.load %arg4[%c4, %c0_15] : memref<30x32xf32, #tpu.memory_space<vmem>>, vector<1x32xf32>
    %cst = arith.constant dense<0.000000e+00> : vector<32xf32>
    %46 = vector.multi_reduction <add>, %2, %cst [1] : vector<32x32xf32> to vector<32xf32>
    %47 = vector.shape_cast %46 : vector<32xf32> to vector<32x1xf32>
    %cst_16 = arith.constant 3.200000e+01 : f32
    %48 = vector.broadcast %cst_16 : f32 to vector<32x1xf32>
    %49 = arith.divf %47, %48 : vector<32x1xf32>
    %50 = vector.broadcast %49 : vector<32x1xf32> to vector<32x32xf32>
    %51 = arith.subf %2, %50 : vector<32x32xf32>
    %52 = arith.mulf %51, %51 : vector<32x32xf32>
    %cst_17 = arith.constant dense<0.000000e+00> : vector<32xf32>
    %53 = vector.multi_reduction <add>, %52, %cst_17 [1] : vector<32x32xf32> to vector<32xf32>
    %54 = vector.shape_cast %53 : vector<32xf32> to vector<32x1xf32>
    %cst_18 = arith.constant 3.200000e+01 : f32
    %55 = vector.broadcast %cst_18 : f32 to vector<32x1xf32>
    %56 = arith.divf %54, %55 : vector<32x1xf32>
    %57 = vector.broadcast %49 : vector<32x1xf32> to vector<32x32xf32>
    %58 = arith.subf %2, %57 : vector<32x32xf32>
    %cst_19 = arith.constant 9.99999974E-6 : f32
    %59 = vector.broadcast %cst_19 : f32 to vector<32x1xf32>
    %60 = arith.addf %56, %59 : vector<32x1xf32>
    %61 = math.rsqrt %60 : vector<32x1xf32>
    %62 = vector.broadcast %61 : vector<32x1xf32> to vector<32x32xf32>
    %63 = arith.mulf %58, %62 : vector<32x32xf32>
    %64 = vector.broadcast %44 : vector<1x32xf32> to vector<32x32xf32>
    %65 = arith.mulf %63, %64 : vector<32x32xf32>
    %66 = vector.broadcast %45 : vector<1x32xf32> to vector<32x32xf32>
    %67 = arith.addf %65, %66 : vector<32x32xf32>
    %cst_20 = arith.constant 0.000000e+00 : f32
    %68 = vector.broadcast %cst_20 : f32 to vector<32x32xf32>
    %c8 = arith.constant 8 : index
    %c0_21 = arith.constant 0 : index
    %69 = vector.load %arg4[%c8, %c0_21] : memref<30x32xf32, #tpu.memory_space<vmem>>, vector<1x32xf32>
    %c3_i32_22 = arith.constant 3 : i32
    %70 = tpu.dynamic_rotate %67 by %c3_i32_22 dim 0 : vector<32x32xf32>, i32 -> vector<32x32xf32>
    %cst_23 = arith.constant 0.000000e+00 : f32
    %71 = vector.shape_cast %23 : vector<32x1xi1> to vector<32x1xi1>
    %72 = vector.broadcast %71 : vector<32x1xi1> to vector<32x32xi1>
    %73 = vector.broadcast %cst_23 : f32 to vector<32x32xf32>
    %74 = arith.select %72, %70, %73 : vector<32x32xi1>, vector<32x32xf32>
    %75 = vector.broadcast %69 : vector<1x32xf32> to vector<32x32xf32>
    %76 = arith.mulf %74, %75 : vector<32x32xf32>
    %77 = arith.addf %68, %76 : vector<32x32xf32>
    %c9 = arith.constant 9 : index
    %c0_24 = arith.constant 0 : index
    %78 = vector.load %arg4[%c9, %c0_24] : memref<30x32xf32, #tpu.memory_space<vmem>>, vector<1x32xf32>
    %c2_i32_25 = arith.constant 2 : i32
    %79 = tpu.dynamic_rotate %67 by %c2_i32_25 dim 0 : vector<32x32xf32>, i32 -> vector<32x32xf32>
    %cst_26 = arith.constant 0.000000e+00 : f32
    %80 = vector.shape_cast %27 : vector<32x1xi1> to vector<32x1xi1>
    %81 = vector.broadcast %80 : vector<32x1xi1> to vector<32x32xi1>
    %82 = vector.broadcast %cst_26 : f32 to vector<32x32xf32>
    %83 = arith.select %81, %79, %82 : vector<32x32xi1>, vector<32x32xf32>
    %84 = vector.broadcast %78 : vector<1x32xf32> to vector<32x32xf32>
    %85 = arith.mulf %83, %84 : vector<32x32xf32>
    %86 = arith.addf %77, %85 : vector<32x32xf32>
    %c10 = arith.constant 10 : index
    %c0_27 = arith.constant 0 : index
    %87 = vector.load %arg4[%c10, %c0_27] : memref<30x32xf32, #tpu.memory_space<vmem>>, vector<1x32xf32>
    %c1_i32_28 = arith.constant 1 : i32
    %88 = tpu.dynamic_rotate %67 by %c1_i32_28 dim 0 : vector<32x32xf32>, i32 -> vector<32x32xf32>
    %cst_29 = arith.constant 0.000000e+00 : f32
    %89 = vector.shape_cast %31 : vector<32x1xi1> to vector<32x1xi1>
    %90 = vector.broadcast %89 : vector<32x1xi1> to vector<32x32xi1>
    %91 = vector.broadcast %cst_29 : f32 to vector<32x32xf32>
    %92 = arith.select %90, %88, %91 : vector<32x32xi1>, vector<32x32xf32>
    %93 = vector.broadcast %87 : vector<1x32xf32> to vector<32x32xf32>
    %94 = arith.mulf %92, %93 : vector<32x32xf32>
    %95 = arith.addf %86, %94 : vector<32x32xf32>
    %c11 = arith.constant 11 : index
    %c0_30 = arith.constant 0 : index
    %96 = vector.load %arg4[%c11, %c0_30] : memref<30x32xf32, #tpu.memory_space<vmem>>, vector<1x32xf32>
    %97 = vector.broadcast %96 : vector<1x32xf32> to vector<32x32xf32>
    %98 = arith.mulf %67, %97 : vector<32x32xf32>
    %99 = arith.addf %95, %98 : vector<32x32xf32>
    %c12 = arith.constant 12 : index
    %c0_31 = arith.constant 0 : index
    %100 = vector.load %arg4[%c12, %c0_31] : memref<30x32xf32, #tpu.memory_space<vmem>>, vector<1x32xf32>
    %c31_i32 = arith.constant 31 : i32
    %101 = tpu.dynamic_rotate %67 by %c31_i32 dim 0 : vector<32x32xf32>, i32 -> vector<32x32xf32>
    %cst_32 = arith.constant 0.000000e+00 : f32
    %102 = vector.shape_cast %35 : vector<32x1xi1> to vector<32x1xi1>
    %103 = vector.broadcast %102 : vector<32x1xi1> to vector<32x32xi1>
    %104 = vector.broadcast %cst_32 : f32 to vector<32x32xf32>
    %105 = arith.select %103, %101, %104 : vector<32x32xi1>, vector<32x32xf32>
    %106 = vector.broadcast %100 : vector<1x32xf32> to vector<32x32xf32>
    %107 = arith.mulf %105, %106 : vector<32x32xf32>
    %108 = arith.addf %99, %107 : vector<32x32xf32>
    %c13 = arith.constant 13 : index
    %c0_33 = arith.constant 0 : index
    %109 = vector.load %arg4[%c13, %c0_33] : memref<30x32xf32, #tpu.memory_space<vmem>>, vector<1x32xf32>
    %c30_i32 = arith.constant 30 : i32
    %110 = tpu.dynamic_rotate %67 by %c30_i32 dim 0 : vector<32x32xf32>, i32 -> vector<32x32xf32>
    %cst_34 = arith.constant 0.000000e+00 : f32
    %111 = vector.shape_cast %39 : vector<32x1xi1> to vector<32x1xi1>
    %112 = vector.broadcast %111 : vector<32x1xi1> to vector<32x32xi1>
    %113 = vector.broadcast %cst_34 : f32 to vector<32x32xf32>
    %114 = arith.select %112, %110, %113 : vector<32x32xi1>, vector<32x32xf32>
    %115 = vector.broadcast %109 : vector<1x32xf32> to vector<32x32xf32>
    %116 = arith.mulf %114, %115 : vector<32x32xf32>
    %117 = arith.addf %108, %116 : vector<32x32xf32>
    %c14 = arith.constant 14 : index
    %c0_35 = arith.constant 0 : index
    %118 = vector.load %arg4[%c14, %c0_35] : memref<30x32xf32, #tpu.memory_space<vmem>>, vector<1x32xf32>
    %c29_i32 = arith.constant 29 : i32
    %119 = tpu.dynamic_rotate %67 by %c29_i32 dim 0 : vector<32x32xf32>, i32 -> vector<32x32xf32>
    %cst_36 = arith.constant 0.000000e+00 : f32
    %120 = vector.shape_cast %43 : vector<32x1xi1> to vector<32x1xi1>
    %121 = vector.broadcast %120 : vector<32x1xi1> to vector<32x32xi1>
    %122 = vector.broadcast %cst_36 : f32 to vector<32x32xf32>
    %123 = arith.select %121, %119, %122 : vector<32x32xi1>, vector<32x32xf32>
    %124 = vector.broadcast %118 : vector<1x32xf32> to vector<32x32xf32>
    %125 = arith.mulf %123, %124 : vector<32x32xf32>
    %126 = arith.addf %117, %125 : vector<32x32xf32>
    %c0_37 = arith.constant 0 : index
    %c128 = arith.constant 128 : index
    %127 = vector.load %arg3[%c0_37, %c128] : memref<32x256xf32, #tpu.memory_space<vmem>>, vector<32x32xf32>
    %cst_38 = arith.constant dense<0.000000e+00> : vector<32x32xf32>
    %128 = tpu.matmul %126, %127, %cst_38 {dimension_numbers = #tpu.dot_dimension_numbers<[1], [0], [0], [1], [0, 0, 1, 1], [], []>} : vector<32x32xf32>, vector<32x32xf32>, vector<32x32xf32> -> vector<32x32xf32>
    %c22 = arith.constant 22 : index
    %c0_39 = arith.constant 0 : index
    %129 = vector.load %arg4[%c22, %c0_39] : memref<30x32xf32, #tpu.memory_space<vmem>>, vector<1x32xf32>
    %130 = vector.broadcast %129 : vector<1x32xf32> to vector<32x32xf32>
    %131 = arith.addf %128, %130 : vector<32x32xf32>
    %cst_40 = arith.constant 0.000000e+00 : f32
    %132 = vector.broadcast %cst_40 : f32 to vector<32x32xf32>
    %133 = arith.maximumf %131, %132 : vector<32x32xf32>
    %134 = arith.addf %133, %2 : vector<32x32xf32>
    %c1 = arith.constant 1 : index
    %c0_41 = arith.constant 0 : index
    %135 = vector.load %arg4[%c1, %c0_41] : memref<30x32xf32, #tpu.memory_space<vmem>>, vector<1x32xf32>
    %c5 = arith.constant 5 : index
    %c0_42 = arith.constant 0 : index
    %136 = vector.load %arg4[%c5, %c0_42] : memref<30x32xf32, #tpu.memory_space<vmem>>, vector<1x32xf32>
    %cst_43 = arith.constant dense<0.000000e+00> : vector<32xf32>
    %137 = vector.multi_reduction <add>, %134, %cst_43 [1] : vector<32x32xf32> to vector<32xf32>
    %138 = vector.shape_cast %137 : vector<32xf32> to vector<32x1xf32>
    %cst_44 = arith.constant 3.200000e+01 : f32
    %139 = vector.broadcast %cst_44 : f32 to vector<32x1xf32>
    %140 = arith.divf %138, %139 : vector<32x1xf32>
    %141 = vector.broadcast %140 : vector<32x1xf32> to vector<32x32xf32>
    %142 = arith.subf %134, %141 : vector<32x32xf32>
    %143 = arith.mulf %142, %142 : vector<32x32xf32>
    %cst_45 = arith.constant dense<0.000000e+00> : vector<32xf32>
    %144 = vector.multi_reduction <add>, %143, %cst_45 [1] : vector<32x32xf32> to vector<32xf32>
    %145 = vector.shape_cast %144 : vector<32xf32> to vector<32x1xf32>
    %cst_46 = arith.constant 3.200000e+01 : f32
    %146 = vector.broadcast %cst_46 : f32 to vector<32x1xf32>
    %147 = arith.divf %145, %146 : vector<32x1xf32>
    %148 = vector.broadcast %140 : vector<32x1xf32> to vector<32x32xf32>
    %149 = arith.subf %134, %148 : vector<32x32xf32>
    %cst_47 = arith.constant 9.99999974E-6 : f32
    %150 = vector.broadcast %cst_47 : f32 to vector<32x1xf32>
    %151 = arith.addf %147, %150 : vector<32x1xf32>
    %152 = math.rsqrt %151 : vector<32x1xf32>
    %153 = vector.broadcast %152 : vector<32x1xf32> to vector<32x32xf32>
    %154 = arith.mulf %149, %153 : vector<32x32xf32>
    %155 = vector.broadcast %135 : vector<1x32xf32> to vector<32x32xf32>
    %156 = arith.mulf %154, %155 : vector<32x32xf32>
    %157 = vector.broadcast %136 : vector<1x32xf32> to vector<32x32xf32>
    %158 = arith.addf %156, %157 : vector<32x32xf32>
    %cst_48 = arith.constant 0.000000e+00 : f32
    %159 = vector.broadcast %cst_48 : f32 to vector<32x32xf32>
    %c15 = arith.constant 15 : index
    %c0_49 = arith.constant 0 : index
    %160 = vector.load %arg4[%c15, %c0_49] : memref<30x32xf32, #tpu.memory_space<vmem>>, vector<1x32xf32>
    %c3_i32_50 = arith.constant 3 : i32
    %161 = tpu.dynamic_rotate %158 by %c3_i32_50 dim 0 : vector<32x32xf32>, i32 -> vector<32x32xf32>
    %cst_51 = arith.constant 0.000000e+00 : f32
    %162 = vector.shape_cast %23 : vector<32x1xi1> to vector<32x1xi1>
    %163 = vector.broadcast %162 : vector<32x1xi1> to vector<32x32xi1>
    %164 = vector.broadcast %cst_51 : f32 to vector<32x32xf32>
    %165 = arith.select %163, %161, %164 : vector<32x32xi1>, vector<32x32xf32>
    %166 = vector.broadcast %160 : vector<1x32xf32> to vector<32x32xf32>
    %167 = arith.mulf %165, %166 : vector<32x32xf32>
    %168 = arith.addf %159, %167 : vector<32x32xf32>
    %c16 = arith.constant 16 : index
    %c0_52 = arith.constant 0 : index
    %169 = vector.load %arg4[%c16, %c0_52] : memref<30x32xf32, #tpu.memory_space<vmem>>, vector<1x32xf32>
    %c2_i32_53 = arith.constant 2 : i32
    %170 = tpu.dynamic_rotate %158 by %c2_i32_53 dim 0 : vector<32x32xf32>, i32 -> vector<32x32xf32>
    %cst_54 = arith.constant 0.000000e+00 : f32
    %171 = vector.shape_cast %27 : vector<32x1xi1> to vector<32x1xi1>
    %172 = vector.broadcast %171 : vector<32x1xi1> to vector<32x32xi1>
    %173 = vector.broadcast %cst_54 : f32 to vector<32x32xf32>
    %174 = arith.select %172, %170, %173 : vector<32x32xi1>, vector<32x32xf32>
    %175 = vector.broadcast %169 : vector<1x32xf32> to vector<32x32xf32>
    %176 = arith.mulf %174, %175 : vector<32x32xf32>
    %177 = arith.addf %168, %176 : vector<32x32xf32>
    %c17 = arith.constant 17 : index
    %c0_55 = arith.constant 0 : index
    %178 = vector.load %arg4[%c17, %c0_55] : memref<30x32xf32, #tpu.memory_space<vmem>>, vector<1x32xf32>
    %c1_i32_56 = arith.constant 1 : i32
    %179 = tpu.dynamic_rotate %158 by %c1_i32_56 dim 0 : vector<32x32xf32>, i32 -> vector<32x32xf32>
    %cst_57 = arith.constant 0.000000e+00 : f32
    %180 = vector.shape_cast %31 : vector<32x1xi1> to vector<32x1xi1>
    %181 = vector.broadcast %180 : vector<32x1xi1> to vector<32x32xi1>
    %182 = vector.broadcast %cst_57 : f32 to vector<32x32xf32>
    %183 = arith.select %181, %179, %182 : vector<32x32xi1>, vector<32x32xf32>
    %184 = vector.broadcast %178 : vector<1x32xf32> to vector<32x32xf32>
    %185 = arith.mulf %183, %184 : vector<32x32xf32>
    %186 = arith.addf %177, %185 : vector<32x32xf32>
    %c18 = arith.constant 18 : index
    %c0_58 = arith.constant 0 : index
    %187 = vector.load %arg4[%c18, %c0_58] : memref<30x32xf32, #tpu.memory_space<vmem>>, vector<1x32xf32>
    %188 = vector.broadcast %187 : vector<1x32xf32> to vector<32x32xf32>
    %189 = arith.mulf %158, %188 : vector<32x32xf32>
    %190 = arith.addf %186, %189 : vector<32x32xf32>
    %c19 = arith.constant 19 : index
    %c0_59 = arith.constant 0 : index
    %191 = vector.load %arg4[%c19, %c0_59] : memref<30x32xf32, #tpu.memory_space<vmem>>, vector<1x32xf32>
    %c31_i32_60 = arith.constant 31 : i32
    %192 = tpu.dynamic_rotate %158 by %c31_i32_60 dim 0 : vector<32x32xf32>, i32 -> vector<32x32xf32>
    %cst_61 = arith.constant 0.000000e+00 : f32
    %193 = vector.shape_cast %35 : vector<32x1xi1> to vector<32x1xi1>
    %194 = vector.broadcast %193 : vector<32x1xi1> to vector<32x32xi1>
    %195 = vector.broadcast %cst_61 : f32 to vector<32x32xf32>
    %196 = arith.select %194, %192, %195 : vector<32x32xi1>, vector<32x32xf32>
    %197 = vector.broadcast %191 : vector<1x32xf32> to vector<32x32xf32>
    %198 = arith.mulf %196, %197 : vector<32x32xf32>
    %199 = arith.addf %190, %198 : vector<32x32xf32>
    %c20 = arith.constant 20 : index
    %c0_62 = arith.constant 0 : index
    %200 = vector.load %arg4[%c20, %c0_62] : memref<30x32xf32, #tpu.memory_space<vmem>>, vector<1x32xf32>
    %c30_i32_63 = arith.constant 30 : i32
    %201 = tpu.dynamic_rotate %158 by %c30_i32_63 dim 0 : vector<32x32xf32>, i32 -> vector<32x32xf32>
    %cst_64 = arith.constant 0.000000e+00 : f32
    %202 = vector.shape_cast %39 : vector<32x1xi1> to vector<32x1xi1>
    %203 = vector.broadcast %202 : vector<32x1xi1> to vector<32x32xi1>
    %204 = vector.broadcast %cst_64 : f32 to vector<32x32xf32>
    %205 = arith.select %203, %201, %204 : vector<32x32xi1>, vector<32x32xf32>
    %206 = vector.broadcast %200 : vector<1x32xf32> to vector<32x32xf32>
    %207 = arith.mulf %205, %206 : vector<32x32xf32>
    %208 = arith.addf %199, %207 : vector<32x32xf32>
    %c21 = arith.constant 21 : index
    %c0_65 = arith.constant 0 : index
    %209 = vector.load %arg4[%c21, %c0_65] : memref<30x32xf32, #tpu.memory_space<vmem>>, vector<1x32xf32>
    %c29_i32_66 = arith.constant 29 : i32
    %210 = tpu.dynamic_rotate %158 by %c29_i32_66 dim 0 : vector<32x32xf32>, i32 -> vector<32x32xf32>
    %cst_67 = arith.constant 0.000000e+00 : f32
    %211 = vector.shape_cast %43 : vector<32x1xi1> to vector<32x1xi1>
    %212 = vector.broadcast %211 : vector<32x1xi1> to vector<32x32xi1>
    %213 = vector.broadcast %cst_67 : f32 to vector<32x32xf32>
    %214 = arith.select %212, %210, %213 : vector<32x32xi1>, vector<32x32xf32>
    %215 = vector.broadcast %209 : vector<1x32xf32> to vector<32x32xf32>
    %216 = arith.mulf %214, %215 : vector<32x32xf32>
    %217 = arith.addf %208, %216 : vector<32x32xf32>
    %c0_68 = arith.constant 0 : index
    %c160 = arith.constant 160 : index
    %218 = vector.load %arg3[%c0_68, %c160] : memref<32x256xf32, #tpu.memory_space<vmem>>, vector<32x32xf32>
    %cst_69 = arith.constant dense<0.000000e+00> : vector<32x32xf32>
    %219 = tpu.matmul %217, %218, %cst_69 {dimension_numbers = #tpu.dot_dimension_numbers<[1], [0], [0], [1], [0, 0, 1, 1], [], []>} : vector<32x32xf32>, vector<32x32xf32>, vector<32x32xf32> -> vector<32x32xf32>
    %c23 = arith.constant 23 : index
    %c0_70 = arith.constant 0 : index
    %220 = vector.load %arg4[%c23, %c0_70] : memref<30x32xf32, #tpu.memory_space<vmem>>, vector<1x32xf32>
    %221 = vector.broadcast %220 : vector<1x32xf32> to vector<32x32xf32>
    %222 = arith.addf %219, %221 : vector<32x32xf32>
    %cst_71 = arith.constant 0.000000e+00 : f32
    %223 = vector.broadcast %cst_71 : f32 to vector<32x32xf32>
    %224 = arith.maximumf %222, %223 : vector<32x32xf32>
    %225 = arith.addf %224, %134 : vector<32x32xf32>
    %c2 = arith.constant 2 : index
    %c0_72 = arith.constant 0 : index
    %226 = vector.load %arg4[%c2, %c0_72] : memref<30x32xf32, #tpu.memory_space<vmem>>, vector<1x32xf32>
    %c6 = arith.constant 6 : index
    %c0_73 = arith.constant 0 : index
    %227 = vector.load %arg4[%c6, %c0_73] : memref<30x32xf32, #tpu.memory_space<vmem>>, vector<1x32xf32>
    %cst_74 = arith.constant dense<0.000000e+00> : vector<32xf32>
    %228 = vector.multi_reduction <add>, %225, %cst_74 [1] : vector<32x32xf32> to vector<32xf32>
    %229 = vector.shape_cast %228 : vector<32xf32> to vector<32x1xf32>
    %cst_75 = arith.constant 3.200000e+01 : f32
    %230 = vector.broadcast %cst_75 : f32 to vector<32x1xf32>
    %231 = arith.divf %229, %230 : vector<32x1xf32>
    %232 = vector.broadcast %231 : vector<32x1xf32> to vector<32x32xf32>
    %233 = arith.subf %225, %232 : vector<32x32xf32>
    %234 = arith.mulf %233, %233 : vector<32x32xf32>
    %cst_76 = arith.constant dense<0.000000e+00> : vector<32xf32>
    %235 = vector.multi_reduction <add>, %234, %cst_76 [1] : vector<32x32xf32> to vector<32xf32>
    %236 = vector.shape_cast %235 : vector<32xf32> to vector<32x1xf32>
    %cst_77 = arith.constant 3.200000e+01 : f32
    %237 = vector.broadcast %cst_77 : f32 to vector<32x1xf32>
    %238 = arith.divf %236, %237 : vector<32x1xf32>
    %239 = vector.broadcast %231 : vector<32x1xf32> to vector<32x32xf32>
    %240 = arith.subf %225, %239 : vector<32x32xf32>
    %cst_78 = arith.constant 9.99999974E-6 : f32
    %241 = vector.broadcast %cst_78 : f32 to vector<32x1xf32>
    %242 = arith.addf %238, %241 : vector<32x1xf32>
    %243 = math.rsqrt %242 : vector<32x1xf32>
    %244 = vector.broadcast %243 : vector<32x1xf32> to vector<32x32xf32>
    %245 = arith.mulf %240, %244 : vector<32x32xf32>
    %246 = vector.broadcast %226 : vector<1x32xf32> to vector<32x32xf32>
    %247 = arith.mulf %245, %246 : vector<32x32xf32>
    %248 = vector.broadcast %227 : vector<1x32xf32> to vector<32x32xf32>
    %249 = arith.addf %247, %248 : vector<32x32xf32>
    %c0_79 = arith.constant 0 : index
    %c0_80 = arith.constant 0 : index
    %250 = vector.load %arg3[%c0_79, %c0_80] : memref<32x256xf32, #tpu.memory_space<vmem>>, vector<32x96xf32>
    %cst_81 = arith.constant dense<0.000000e+00> : vector<32x96xf32>
    %251 = tpu.matmul %249, %250, %cst_81 {dimension_numbers = #tpu.dot_dimension_numbers<[1], [0], [0], [1], [0, 0, 1, 1], [], []>} : vector<32x32xf32>, vector<32x96xf32>, vector<32x96xf32> -> vector<32x96xf32>
    %252 = vector.extract_strided_slice %251 {offsets = [0, 0], sizes = [32, 32], strides = [1, 1]} : vector<32x96xf32> to vector<32x32xf32>
    %c24 = arith.constant 24 : index
    %c0_82 = arith.constant 0 : index
    %253 = vector.load %arg4[%c24, %c0_82] : memref<30x32xf32, #tpu.memory_space<vmem>>, vector<1x32xf32>
    %254 = vector.broadcast %253 : vector<1x32xf32> to vector<32x32xf32>
    %255 = arith.addf %252, %254 : vector<32x32xf32>
    %256 = vector.extract_strided_slice %251 {offsets = [0, 32], sizes = [32, 32], strides = [1, 1]} : vector<32x96xf32> to vector<32x32xf32>
    %c25 = arith.constant 25 : index
    %c0_83 = arith.constant 0 : index
    %257 = vector.load %arg4[%c25, %c0_83] : memref<30x32xf32, #tpu.memory_space<vmem>>, vector<1x32xf32>
    %258 = vector.broadcast %257 : vector<1x32xf32> to vector<32x32xf32>
    %259 = arith.addf %256, %258 : vector<32x32xf32>
    %260 = vector.extract_strided_slice %251 {offsets = [0, 64], sizes = [32, 32], strides = [1, 1]} : vector<32x96xf32> to vector<32x32xf32>
    %c26 = arith.constant 26 : index
    %c0_84 = arith.constant 0 : index
    %261 = vector.load %arg4[%c26, %c0_84] : memref<30x32xf32, #tpu.memory_space<vmem>>, vector<1x32xf32>
    %262 = vector.broadcast %261 : vector<1x32xf32> to vector<32x32xf32>
    %263 = arith.addf %260, %262 : vector<32x32xf32>
    %c0_85 = arith.constant 0 : index
    %c0_86 = arith.constant 0 : index
    %264 = vector.load %arg1[%c0_85, %c0_86] : memref<2x16xf32, #tpu.memory_space<vmem>>, vector<1x16xf32>
    %cst_87 = arith.constant 1.000000e+00 : f32
    %265 = vector.broadcast %cst_87 : f32 to vector<1x16xf32>
    %266 = arith.subf %265, %264 : vector<1x16xf32>
    %cst_88 = arith.constant -1.000000e+30 : f32
    %267 = vector.broadcast %cst_88 : f32 to vector<1x16xf32>
    %268 = arith.mulf %266, %267 : vector<1x16xf32>
    %269 = vector.extract_strided_slice %255 {offsets = [0, 0], sizes = [16, 8], strides = [1, 1]} : vector<32x32xf32> to vector<16x8xf32>
    %270 = vector.extract_strided_slice %259 {offsets = [0, 0], sizes = [16, 8], strides = [1, 1]} : vector<32x32xf32> to vector<16x8xf32>
    %271 = vector.extract_strided_slice %263 {offsets = [0, 0], sizes = [16, 8], strides = [1, 1]} : vector<32x32xf32> to vector<16x8xf32>
    %cst_89 = arith.constant dense<0.000000e+00> : vector<16x16xf32>
    %272 = tpu.matmul %269, %270, %cst_89 {dimension_numbers = #tpu.dot_dimension_numbers<[1], [1], [0], [0], [0, 0, 1, 0], [], []>} : vector<16x8xf32>, vector<16x8xf32>, vector<16x16xf32> -> vector<16x16xf32>
    %273 = vector.broadcast %268 : vector<1x16xf32> to vector<16x16xf32>
    %274 = arith.addf %272, %273 : vector<16x16xf32>
    %cst_90 = arith.constant dense<0xFF800000> : vector<16xf32>
    %275 = vector.multi_reduction <maximumf>, %274, %cst_90 [1] : vector<16x16xf32> to vector<16xf32>
    %276 = vector.shape_cast %275 : vector<16xf32> to vector<16x1xf32>
    %277 = vector.broadcast %276 : vector<16x1xf32> to vector<16x16xf32>
    %278 = arith.subf %274, %277 : vector<16x16xf32>
    %279 = math.exp %278 : vector<16x16xf32>
    %cst_91 = arith.constant dense<0.000000e+00> : vector<16xf32>
    %280 = vector.multi_reduction <add>, %279, %cst_91 [1] : vector<16x16xf32> to vector<16xf32>
    %281 = vector.shape_cast %280 : vector<16xf32> to vector<16x1xf32>
    %282 = tpu.reciprocal %281 {approx = true} : vector<16x1xf32> -> vector<16x1xf32>
    %283 = vector.broadcast %282 : vector<16x1xf32> to vector<16x16xf32>
    %284 = arith.mulf %279, %283 : vector<16x16xf32>
    %cst_92 = arith.constant dense<0.000000e+00> : vector<16x8xf32>
    %285 = tpu.matmul %284, %271, %cst_92 {dimension_numbers = #tpu.dot_dimension_numbers<[1], [0], [0], [1], [0, 0, 1, 1], [], []>} : vector<16x16xf32>, vector<16x8xf32>, vector<16x8xf32> -> vector<16x8xf32>
    %c0_93 = arith.constant 0 : index
    %c0_94 = arith.constant 0 : index
    %286 = vector.load %arg6[%c0_93, %c0_94] : memref<32x32xf32, #tpu.memory_space<vmem>>, vector<16x8xf32>
    tpu.vector_store %arg6[%c0_93, %c0_94], %285 {strides = array<i32>} : memref<32x32xf32, #tpu.memory_space<vmem>>, vector<16x8xf32>,
    %287 = vector.extract_strided_slice %255 {offsets = [0, 8], sizes = [16, 8], strides = [1, 1]} : vector<32x32xf32> to vector<16x8xf32>
    %288 = vector.extract_strided_slice %259 {offsets = [0, 8], sizes = [16, 8], strides = [1, 1]} : vector<32x32xf32> to vector<16x8xf32>
    %289 = vector.extract_strided_slice %263 {offsets = [0, 8], sizes = [16, 8], strides = [1, 1]} : vector<32x32xf32> to vector<16x8xf32>
    %cst_95 = arith.constant dense<0.000000e+00> : vector<16x16xf32>
    %290 = tpu.matmul %287, %288, %cst_95 {dimension_numbers = #tpu.dot_dimension_numbers<[1], [1], [0], [0], [0, 0, 1, 0], [], []>} : vector<16x8xf32>, vector<16x8xf32>, vector<16x16xf32> -> vector<16x16xf32>
    %291 = vector.broadcast %268 : vector<1x16xf32> to vector<16x16xf32>
    %292 = arith.addf %290, %291 : vector<16x16xf32>
    %cst_96 = arith.constant dense<0xFF800000> : vector<16xf32>
    %293 = vector.multi_reduction <maximumf>, %292, %cst_96 [1] : vector<16x16xf32> to vector<16xf32>
    %294 = vector.shape_cast %293 : vector<16xf32> to vector<16x1xf32>
    %295 = vector.broadcast %294 : vector<16x1xf32> to vector<16x16xf32>
    %296 = arith.subf %292, %295 : vector<16x16xf32>
    %297 = math.exp %296 : vector<16x16xf32>
    %cst_97 = arith.constant dense<0.000000e+00> : vector<16xf32>
    %298 = vector.multi_reduction <add>, %297, %cst_97 [1] : vector<16x16xf32> to vector<16xf32>
    %299 = vector.shape_cast %298 : vector<16xf32> to vector<16x1xf32>
    %300 = tpu.reciprocal %299 {approx = true} : vector<16x1xf32> -> vector<16x1xf32>
    %301 = vector.broadcast %300 : vector<16x1xf32> to vector<16x16xf32>
    %302 = arith.mulf %297, %301 : vector<16x16xf32>
    %cst_98 = arith.constant dense<0.000000e+00> : vector<16x8xf32>
    %303 = tpu.matmul %302, %289, %cst_98 {dimension_numbers = #tpu.dot_dimension_numbers<[1], [0], [0], [1], [0, 0, 1, 1], [], []>} : vector<16x16xf32>, vector<16x8xf32>, vector<16x8xf32> -> vector<16x8xf32>
    %c0_99 = arith.constant 0 : index
    %c8_100 = arith.constant 8 : index
    %304 = vector.load %arg6[%c0_99, %c8_100] : memref<32x32xf32, #tpu.memory_space<vmem>>, vector<16x8xf32>
    tpu.vector_store %arg6[%c0_99, %c8_100], %303 {strides = array<i32>} : memref<32x32xf32, #tpu.memory_space<vmem>>, vector<16x8xf32>,
    %305 = vector.extract_strided_slice %255 {offsets = [0, 16], sizes = [16, 8], strides = [1, 1]} : vector<32x32xf32> to vector<16x8xf32>
    %306 = vector.extract_strided_slice %259 {offsets = [0, 16], sizes = [16, 8], strides = [1, 1]} : vector<32x32xf32> to vector<16x8xf32>
    %307 = vector.extract_strided_slice %263 {offsets = [0, 16], sizes = [16, 8], strides = [1, 1]} : vector<32x32xf32> to vector<16x8xf32>
    %cst_101 = arith.constant dense<0.000000e+00> : vector<16x16xf32>
    %308 = tpu.matmul %305, %306, %cst_101 {dimension_numbers = #tpu.dot_dimension_numbers<[1], [1], [0], [0], [0, 0, 1, 0], [], []>} : vector<16x8xf32>, vector<16x8xf32>, vector<16x16xf32> -> vector<16x16xf32>
    %309 = vector.broadcast %268 : vector<1x16xf32> to vector<16x16xf32>
    %310 = arith.addf %308, %309 : vector<16x16xf32>
    %cst_102 = arith.constant dense<0xFF800000> : vector<16xf32>
    %311 = vector.multi_reduction <maximumf>, %310, %cst_102 [1] : vector<16x16xf32> to vector<16xf32>
    %312 = vector.shape_cast %311 : vector<16xf32> to vector<16x1xf32>
    %313 = vector.broadcast %312 : vector<16x1xf32> to vector<16x16xf32>
    %314 = arith.subf %310, %313 : vector<16x16xf32>
    %315 = math.exp %314 : vector<16x16xf32>
    %cst_103 = arith.constant dense<0.000000e+00> : vector<16xf32>
    %316 = vector.multi_reduction <add>, %315, %cst_103 [1] : vector<16x16xf32> to vector<16xf32>
    %317 = vector.shape_cast %316 : vector<16xf32> to vector<16x1xf32>
    %318 = tpu.reciprocal %317 {approx = true} : vector<16x1xf32> -> vector<16x1xf32>
    %319 = vector.broadcast %318 : vector<16x1xf32> to vector<16x16xf32>
    %320 = arith.mulf %315, %319 : vector<16x16xf32>
    %cst_104 = arith.constant dense<0.000000e+00> : vector<16x8xf32>
    %321 = tpu.matmul %320, %307, %cst_104 {dimension_numbers = #tpu.dot_dimension_numbers<[1], [0], [0], [1], [0, 0, 1, 1], [], []>} : vector<16x16xf32>, vector<16x8xf32>, vector<16x8xf32> -> vector<16x8xf32>
    %c0_105 = arith.constant 0 : index
    %c16_106 = arith.constant 16 : index
    %322 = vector.load %arg6[%c0_105, %c16_106] : memref<32x32xf32, #tpu.memory_space<vmem>>, vector<16x8xf32>
    tpu.vector_store %arg6[%c0_105, %c16_106], %321 {strides = array<i32>} : memref<32x32xf32, #tpu.memory_space<vmem>>, vector<16x8xf32>,
    %323 = vector.extract_strided_slice %255 {offsets = [0, 24], sizes = [16, 8], strides = [1, 1]} : vector<32x32xf32> to vector<16x8xf32>
    %324 = vector.extract_strided_slice %259 {offsets = [0, 24], sizes = [16, 8], strides = [1, 1]} : vector<32x32xf32> to vector<16x8xf32>
    %325 = vector.extract_strided_slice %263 {offsets = [0, 24], sizes = [16, 8], strides = [1, 1]} : vector<32x32xf32> to vector<16x8xf32>
    %cst_107 = arith.constant dense<0.000000e+00> : vector<16x16xf32>
    %326 = tpu.matmul %323, %324, %cst_107 {dimension_numbers = #tpu.dot_dimension_numbers<[1], [1], [0], [0], [0, 0, 1, 0], [], []>} : vector<16x8xf32>, vector<16x8xf32>, vector<16x16xf32> -> vector<16x16xf32>
    %327 = vector.broadcast %268 : vector<1x16xf32> to vector<16x16xf32>
    %328 = arith.addf %326, %327 : vector<16x16xf32>
    %cst_108 = arith.constant dense<0xFF800000> : vector<16xf32>
    %329 = vector.multi_reduction <maximumf>, %328, %cst_108 [1] : vector<16x16xf32> to vector<16xf32>
    %330 = vector.shape_cast %329 : vector<16xf32> to vector<16x1xf32>
    %331 = vector.broadcast %330 : vector<16x1xf32> to vector<16x16xf32>
    %332 = arith.subf %328, %331 : vector<16x16xf32>
    %333 = math.exp %332 : vector<16x16xf32>
    %cst_109 = arith.constant dense<0.000000e+00> : vector<16xf32>
    %334 = vector.multi_reduction <add>, %333, %cst_109 [1] : vector<16x16xf32> to vector<16xf32>
    %335 = vector.shape_cast %334 : vector<16xf32> to vector<16x1xf32>
    %336 = tpu.reciprocal %335 {approx = true} : vector<16x1xf32> -> vector<16x1xf32>
    %337 = vector.broadcast %336 : vector<16x1xf32> to vector<16x16xf32>
    %338 = arith.mulf %333, %337 : vector<16x16xf32>
    %cst_110 = arith.constant dense<0.000000e+00> : vector<16x8xf32>
    %339 = tpu.matmul %338, %325, %cst_110 {dimension_numbers = #tpu.dot_dimension_numbers<[1], [0], [0], [1], [0, 0, 1, 1], [], []>} : vector<16x16xf32>, vector<16x8xf32>, vector<16x8xf32> -> vector<16x8xf32>
    %c0_111 = arith.constant 0 : index
    %c24_112 = arith.constant 24 : index
    %340 = vector.load %arg6[%c0_111, %c24_112] : memref<32x32xf32, #tpu.memory_space<vmem>>, vector<16x8xf32>
    tpu.vector_store %arg6[%c0_111, %c24_112], %339 {strides = array<i32>} : memref<32x32xf32, #tpu.memory_space<vmem>>, vector<16x8xf32>,
    %c1_113 = arith.constant 1 : index
    %c0_114 = arith.constant 0 : index
    %341 = vector.load %arg1[%c1_113, %c0_114] : memref<2x16xf32, #tpu.memory_space<vmem>>, vector<1x16xf32>
    %cst_115 = arith.constant 1.000000e+00 : f32
    %342 = vector.broadcast %cst_115 : f32 to vector<1x16xf32>
    %343 = arith.subf %342, %341 : vector<1x16xf32>
    %cst_116 = arith.constant -1.000000e+30 : f32
    %344 = vector.broadcast %cst_116 : f32 to vector<1x16xf32>
    %345 = arith.mulf %343, %344 : vector<1x16xf32>
    %346 = vector.extract_strided_slice %255 {offsets = [16, 0], sizes = [16, 8], strides = [1, 1]} : vector<32x32xf32> to vector<16x8xf32>
    %347 = vector.extract_strided_slice %259 {offsets = [16, 0], sizes = [16, 8], strides = [1, 1]} : vector<32x32xf32> to vector<16x8xf32>
    %348 = vector.extract_strided_slice %263 {offsets = [16, 0], sizes = [16, 8], strides = [1, 1]} : vector<32x32xf32> to vector<16x8xf32>
    %cst_117 = arith.constant dense<0.000000e+00> : vector<16x16xf32>
    %349 = tpu.matmul %346, %347, %cst_117 {dimension_numbers = #tpu.dot_dimension_numbers<[1], [1], [0], [0], [0, 0, 1, 0], [], []>} : vector<16x8xf32>, vector<16x8xf32>, vector<16x16xf32> -> vector<16x16xf32>
    %350 = vector.broadcast %345 : vector<1x16xf32> to vector<16x16xf32>
    %351 = arith.addf %349, %350 : vector<16x16xf32>
    %cst_118 = arith.constant dense<0xFF800000> : vector<16xf32>
    %352 = vector.multi_reduction <maximumf>, %351, %cst_118 [1] : vector<16x16xf32> to vector<16xf32>
    %353 = vector.shape_cast %352 : vector<16xf32> to vector<16x1xf32>
    %354 = vector.broadcast %353 : vector<16x1xf32> to vector<16x16xf32>
    %355 = arith.subf %351, %354 : vector<16x16xf32>
    %356 = math.exp %355 : vector<16x16xf32>
    %cst_119 = arith.constant dense<0.000000e+00> : vector<16xf32>
    %357 = vector.multi_reduction <add>, %356, %cst_119 [1] : vector<16x16xf32> to vector<16xf32>
    %358 = vector.shape_cast %357 : vector<16xf32> to vector<16x1xf32>
    %359 = tpu.reciprocal %358 {approx = true} : vector<16x1xf32> -> vector<16x1xf32>
    %360 = vector.broadcast %359 : vector<16x1xf32> to vector<16x16xf32>
    %361 = arith.mulf %356, %360 : vector<16x16xf32>
    %cst_120 = arith.constant dense<0.000000e+00> : vector<16x8xf32>
    %362 = tpu.matmul %361, %348, %cst_120 {dimension_numbers = #tpu.dot_dimension_numbers<[1], [0], [0], [1], [0, 0, 1, 1], [], []>} : vector<16x16xf32>, vector<16x8xf32>, vector<16x8xf32> -> vector<16x8xf32>
    %c16_121 = arith.constant 16 : index
    %c0_122 = arith.constant 0 : index
    %363 = vector.load %arg6[%c16_121, %c0_122] : memref<32x32xf32, #tpu.memory_space<vmem>>, vector<16x8xf32>
    tpu.vector_store %arg6[%c16_121, %c0_122], %362 {strides = array<i32>} : memref<32x32xf32, #tpu.memory_space<vmem>>, vector<16x8xf32>,
    %364 = vector.extract_strided_slice %255 {offsets = [16, 8], sizes = [16, 8], strides = [1, 1]} : vector<32x32xf32> to vector<16x8xf32>
    %365 = vector.extract_strided_slice %259 {offsets = [16, 8], sizes = [16, 8], strides = [1, 1]} : vector<32x32xf32> to vector<16x8xf32>
    %366 = vector.extract_strided_slice %263 {offsets = [16, 8], sizes = [16, 8], strides = [1, 1]} : vector<32x32xf32> to vector<16x8xf32>
    %cst_123 = arith.constant dense<0.000000e+00> : vector<16x16xf32>
    %367 = tpu.matmul %364, %365, %cst_123 {dimension_numbers = #tpu.dot_dimension_numbers<[1], [1], [0], [0], [0, 0, 1, 0], [], []>} : vector<16x8xf32>, vector<16x8xf32>, vector<16x16xf32> -> vector<16x16xf32>
    %368 = vector.broadcast %345 : vector<1x16xf32> to vector<16x16xf32>
    %369 = arith.addf %367, %368 : vector<16x16xf32>
    %cst_124 = arith.constant dense<0xFF800000> : vector<16xf32>
    %370 = vector.multi_reduction <maximumf>, %369, %cst_124 [1] : vector<16x16xf32> to vector<16xf32>
    %371 = vector.shape_cast %370 : vector<16xf32> to vector<16x1xf32>
    %372 = vector.broadcast %371 : vector<16x1xf32> to vector<16x16xf32>
    %373 = arith.subf %369, %372 : vector<16x16xf32>
    %374 = math.exp %373 : vector<16x16xf32>
    %cst_125 = arith.constant dense<0.000000e+00> : vector<16xf32>
    %375 = vector.multi_reduction <add>, %374, %cst_125 [1] : vector<16x16xf32> to vector<16xf32>
    %376 = vector.shape_cast %375 : vector<16xf32> to vector<16x1xf32>
    %377 = tpu.reciprocal %376 {approx = true} : vector<16x1xf32> -> vector<16x1xf32>
    %378 = vector.broadcast %377 : vector<16x1xf32> to vector<16x16xf32>
    %379 = arith.mulf %374, %378 : vector<16x16xf32>
    %cst_126 = arith.constant dense<0.000000e+00> : vector<16x8xf32>
    %380 = tpu.matmul %379, %366, %cst_126 {dimension_numbers = #tpu.dot_dimension_numbers<[1], [0], [0], [1], [0, 0, 1, 1], [], []>} : vector<16x16xf32>, vector<16x8xf32>, vector<16x8xf32> -> vector<16x8xf32>
    %c16_127 = arith.constant 16 : index
    %c8_128 = arith.constant 8 : index
    %381 = vector.load %arg6[%c16_127, %c8_128] : memref<32x32xf32, #tpu.memory_space<vmem>>, vector<16x8xf32>
    tpu.vector_store %arg6[%c16_127, %c8_128], %380 {strides = array<i32>} : memref<32x32xf32, #tpu.memory_space<vmem>>, vector<16x8xf32>,
    %382 = vector.extract_strided_slice %255 {offsets = [16, 16], sizes = [16, 8], strides = [1, 1]} : vector<32x32xf32> to vector<16x8xf32>
    %383 = vector.extract_strided_slice %259 {offsets = [16, 16], sizes = [16, 8], strides = [1, 1]} : vector<32x32xf32> to vector<16x8xf32>
    %384 = vector.extract_strided_slice %263 {offsets = [16, 16], sizes = [16, 8], strides = [1, 1]} : vector<32x32xf32> to vector<16x8xf32>
    %cst_129 = arith.constant dense<0.000000e+00> : vector<16x16xf32>
    %385 = tpu.matmul %382, %383, %cst_129 {dimension_numbers = #tpu.dot_dimension_numbers<[1], [1], [0], [0], [0, 0, 1, 0], [], []>} : vector<16x8xf32>, vector<16x8xf32>, vector<16x16xf32> -> vector<16x16xf32>
    %386 = vector.broadcast %345 : vector<1x16xf32> to vector<16x16xf32>
    %387 = arith.addf %385, %386 : vector<16x16xf32>
    %cst_130 = arith.constant dense<0xFF800000> : vector<16xf32>
    %388 = vector.multi_reduction <maximumf>, %387, %cst_130 [1] : vector<16x16xf32> to vector<16xf32>
    %389 = vector.shape_cast %388 : vector<16xf32> to vector<16x1xf32>
    %390 = vector.broadcast %389 : vector<16x1xf32> to vector<16x16xf32>
    %391 = arith.subf %387, %390 : vector<16x16xf32>
    %392 = math.exp %391 : vector<16x16xf32>
    %cst_131 = arith.constant dense<0.000000e+00> : vector<16xf32>
    %393 = vector.multi_reduction <add>, %392, %cst_131 [1] : vector<16x16xf32> to vector<16xf32>
    %394 = vector.shape_cast %393 : vector<16xf32> to vector<16x1xf32>
    %395 = tpu.reciprocal %394 {approx = true} : vector<16x1xf32> -> vector<16x1xf32>
    %396 = vector.broadcast %395 : vector<16x1xf32> to vector<16x16xf32>
    %397 = arith.mulf %392, %396 : vector<16x16xf32>
    %cst_132 = arith.constant dense<0.000000e+00> : vector<16x8xf32>
    %398 = tpu.matmul %397, %384, %cst_132 {dimension_numbers = #tpu.dot_dimension_numbers<[1], [0], [0], [1], [0, 0, 1, 1], [], []>} : vector<16x16xf32>, vector<16x8xf32>, vector<16x8xf32> -> vector<16x8xf32>
    %c16_133 = arith.constant 16 : index
    %c16_134 = arith.constant 16 : index
    %399 = vector.load %arg6[%c16_133, %c16_134] : memref<32x32xf32, #tpu.memory_space<vmem>>, vector<16x8xf32>
    tpu.vector_store %arg6[%c16_133, %c16_134], %398 {strides = array<i32>} : memref<32x32xf32, #tpu.memory_space<vmem>>, vector<16x8xf32>,
    %400 = vector.extract_strided_slice %255 {offsets = [16, 24], sizes = [16, 8], strides = [1, 1]} : vector<32x32xf32> to vector<16x8xf32>
    %401 = vector.extract_strided_slice %259 {offsets = [16, 24], sizes = [16, 8], strides = [1, 1]} : vector<32x32xf32> to vector<16x8xf32>
    %402 = vector.extract_strided_slice %263 {offsets = [16, 24], sizes = [16, 8], strides = [1, 1]} : vector<32x32xf32> to vector<16x8xf32>
    %cst_135 = arith.constant dense<0.000000e+00> : vector<16x16xf32>
    %403 = tpu.matmul %400, %401, %cst_135 {dimension_numbers = #tpu.dot_dimension_numbers<[1], [1], [0], [0], [0, 0, 1, 0], [], []>} : vector<16x8xf32>, vector<16x8xf32>, vector<16x16xf32> -> vector<16x16xf32>
    %404 = vector.broadcast %345 : vector<1x16xf32> to vector<16x16xf32>
    %405 = arith.addf %403, %404 : vector<16x16xf32>
    %cst_136 = arith.constant dense<0xFF800000> : vector<16xf32>
    %406 = vector.multi_reduction <maximumf>, %405, %cst_136 [1] : vector<16x16xf32> to vector<16xf32>
    %407 = vector.shape_cast %406 : vector<16xf32> to vector<16x1xf32>
    %408 = vector.broadcast %407 : vector<16x1xf32> to vector<16x16xf32>
    %409 = arith.subf %405, %408 : vector<16x16xf32>
    %410 = math.exp %409 : vector<16x16xf32>
    %cst_137 = arith.constant dense<0.000000e+00> : vector<16xf32>
    %411 = vector.multi_reduction <add>, %410, %cst_137 [1] : vector<16x16xf32> to vector<16xf32>
    %412 = vector.shape_cast %411 : vector<16xf32> to vector<16x1xf32>
    %413 = tpu.reciprocal %412 {approx = true} : vector<16x1xf32> -> vector<16x1xf32>
    %414 = vector.broadcast %413 : vector<16x1xf32> to vector<16x16xf32>
    %415 = arith.mulf %410, %414 : vector<16x16xf32>
    %cst_138 = arith.constant dense<0.000000e+00> : vector<16x8xf32>
    %416 = tpu.matmul %415, %402, %cst_138 {dimension_numbers = #tpu.dot_dimension_numbers<[1], [0], [0], [1], [0, 0, 1, 1], [], []>} : vector<16x16xf32>, vector<16x8xf32>, vector<16x8xf32> -> vector<16x8xf32>
    %c16_139 = arith.constant 16 : index
    %c24_140 = arith.constant 24 : index
    %417 = vector.load %arg6[%c16_139, %c24_140] : memref<32x32xf32, #tpu.memory_space<vmem>>, vector<16x8xf32>
    tpu.vector_store %arg6[%c16_139, %c24_140], %416 {strides = array<i32>} : memref<32x32xf32, #tpu.memory_space<vmem>>, vector<16x8xf32>,
    %c0_141 = arith.constant 0 : index
    %c0_142 = arith.constant 0 : index
    %418 = vector.load %arg6[%c0_141, %c0_142] : memref<32x32xf32, #tpu.memory_space<vmem>>, vector<32x32xf32>
    %c0_143 = arith.constant 0 : index
    %c96 = arith.constant 96 : index
    %419 = vector.load %arg3[%c0_143, %c96] : memref<32x256xf32, #tpu.memory_space<vmem>>, vector<32x32xf32>
    %cst_144 = arith.constant dense<0.000000e+00> : vector<32x32xf32>
    %420 = tpu.matmul %418, %419, %cst_144 {dimension_numbers = #tpu.dot_dimension_numbers<[1], [0], [0], [1], [0, 0, 1, 1], [], []>} : vector<32x32xf32>, vector<32x32xf32>, vector<32x32xf32> -> vector<32x32xf32>
    %c27 = arith.constant 27 : index
    %c0_145 = arith.constant 0 : index
    %421 = vector.load %arg4[%c27, %c0_145] : memref<30x32xf32, #tpu.memory_space<vmem>>, vector<1x32xf32>
    %422 = vector.broadcast %421 : vector<1x32xf32> to vector<32x32xf32>
    %423 = arith.addf %420, %422 : vector<32x32xf32>
    %424 = arith.addf %423, %225 : vector<32x32xf32>
    %c3 = arith.constant 3 : index
    %c0_146 = arith.constant 0 : index
    %425 = vector.load %arg4[%c3, %c0_146] : memref<30x32xf32, #tpu.memory_space<vmem>>, vector<1x32xf32>
    %c7 = arith.constant 7 : index
    %c0_147 = arith.constant 0 : index
    %426 = vector.load %arg4[%c7, %c0_147] : memref<30x32xf32, #tpu.memory_space<vmem>>, vector<1x32xf32>
    %cst_148 = arith.constant dense<0.000000e+00> : vector<32xf32>
    %427 = vector.multi_reduction <add>, %424, %cst_148 [1] : vector<32x32xf32> to vector<32xf32>
    %428 = vector.shape_cast %427 : vector<32xf32> to vector<32x1xf32>
    %cst_149 = arith.constant 3.200000e+01 : f32
    %429 = vector.broadcast %cst_149 : f32 to vector<32x1xf32>
    %430 = arith.divf %428, %429 : vector<32x1xf32>
    %431 = vector.broadcast %430 : vector<32x1xf32> to vector<32x32xf32>
    %432 = arith.subf %424, %431 : vector<32x32xf32>
    %433 = arith.mulf %432, %432 : vector<32x32xf32>
    %cst_150 = arith.constant dense<0.000000e+00> : vector<32xf32>
    %434 = vector.multi_reduction <add>, %433, %cst_150 [1] : vector<32x32xf32> to vector<32xf32>
    %435 = vector.shape_cast %434 : vector<32xf32> to vector<32x1xf32>
    %cst_151 = arith.constant 3.200000e+01 : f32
    %436 = vector.broadcast %cst_151 : f32 to vector<32x1xf32>
    %437 = arith.divf %435, %436 : vector<32x1xf32>
    %438 = vector.broadcast %430 : vector<32x1xf32> to vector<32x32xf32>
    %439 = arith.subf %424, %438 : vector<32x32xf32>
    %cst_152 = arith.constant 9.99999974E-6 : f32
    %440 = vector.broadcast %cst_152 : f32 to vector<32x1xf32>
    %441 = arith.addf %437, %440 : vector<32x1xf32>
    %442 = math.rsqrt %441 : vector<32x1xf32>
    %443 = vector.broadcast %442 : vector<32x1xf32> to vector<32x32xf32>
    %444 = arith.mulf %439, %443 : vector<32x32xf32>
    %445 = vector.broadcast %425 : vector<1x32xf32> to vector<32x32xf32>
    %446 = arith.mulf %444, %445 : vector<32x32xf32>
    %447 = vector.broadcast %426 : vector<1x32xf32> to vector<32x32xf32>
    %448 = arith.addf %446, %447 : vector<32x32xf32>
    %c0_153 = arith.constant 0 : index
    %c192 = arith.constant 192 : index
    %449 = vector.load %arg3[%c0_153, %c192] : memref<32x256xf32, #tpu.memory_space<vmem>>, vector<32x32xf32>
    %cst_154 = arith.constant dense<0.000000e+00> : vector<32x32xf32>
    %450 = tpu.matmul %448, %449, %cst_154 {dimension_numbers = #tpu.dot_dimension_numbers<[1], [0], [0], [1], [0, 0, 1, 1], [], []>} : vector<32x32xf32>, vector<32x32xf32>, vector<32x32xf32> -> vector<32x32xf32>
    %c28 = arith.constant 28 : index
    %c0_155 = arith.constant 0 : index
    %451 = vector.load %arg4[%c28, %c0_155] : memref<30x32xf32, #tpu.memory_space<vmem>>, vector<1x32xf32>
    %452 = vector.broadcast %451 : vector<1x32xf32> to vector<32x32xf32>
    %453 = arith.addf %450, %452 : vector<32x32xf32>
    %cst_156 = arith.constant 0.000000e+00 : f32
    %454 = vector.broadcast %cst_156 : f32 to vector<32x32xf32>
    %455 = arith.maximumf %453, %454 : vector<32x32xf32>
    %c0_157 = arith.constant 0 : index
    %c224 = arith.constant 224 : index
    %456 = vector.load %arg3[%c0_157, %c224] : memref<32x256xf32, #tpu.memory_space<vmem>>, vector<32x32xf32>
    %cst_158 = arith.constant dense<0.000000e+00> : vector<32x32xf32>
    %457 = tpu.matmul %455, %456, %cst_158 {dimension_numbers = #tpu.dot_dimension_numbers<[1], [0], [0], [1], [0, 0, 1, 1], [], []>} : vector<32x32xf32>, vector<32x32xf32>, vector<32x32xf32> -> vector<32x32xf32>
    %c29 = arith.constant 29 : index
    %c0_159 = arith.constant 0 : index
    %458 = vector.load %arg4[%c29, %c0_159] : memref<30x32xf32, #tpu.memory_space<vmem>>, vector<1x32xf32>
    %459 = vector.broadcast %458 : vector<1x32xf32> to vector<32x32xf32>
    %460 = arith.addf %457, %459 : vector<32x32xf32>
    %461 = arith.addf %460, %424 : vector<32x32xf32>
    %c0_160 = arith.constant 0 : index
    %c0_161 = arith.constant 0 : index
    %462 = vector.load %arg5[%c0_160, %c0_161] : memref<32x32xf32, #tpu.memory_space<vmem>>, vector<32x32xf32>
    tpu.vector_store %arg5[%c0_160, %c0_161], %461 {strides = array<i32>} : memref<32x32xf32, #tpu.memory_space<vmem>>, vector<32x32xf32>,
    return
  }
}

</mosaic_0001>

<bundles_post_ra>
// kernel: qanet_encoder_block.1
= control target key start
LH: loop header
LB: loop body
LE: loop exit
PB: predicated region body
PF: predicated region fallthrough
CT: control target
= control target key end

     0   :  { %vm136_vm0 = vcmask 261120   ;;  %s5183_s0 = inlined_call_operand.vmem [shape: f32[32,32], index: 0, kind: input, shape index: {}]   ;;  %s5184_s1 = inlined_call_operand.vmem [shape: f32[2,16], index: 1, kind: input, shape index: {}]   ;;  %s5185_s2 = inlined_call_operand.vmem [shape: f32[32,32], index: 2, kind: input, shape index: {}]   ;;  %s5186_s3 = inlined_call_operand.vmem [shape: f32[32,256], index: 3, kind: input, shape index: {}]   ;;  %s5187_s4 = inlined_call_operand.vmem [shape: f32[30,32], index: 4, kind: input, shape index: {}]   ;;  %s5188_s5 = inlined_call_operand.hbm [shape: f32[32,32], index: 5, kind: output, shape index: {}]  }
   0x1   :  { %v21_v0 = vld [vmem:[%s5183_s0] sm:$0xff]  ;;  %v22_v2 = vld [vmem:[%s5183_s0 + $0x8] sm:$0xff]  ;;  %v24_v5 = vld [vmem:[%s5183_s0 + $0x18] sm:$0xff] }
   0x2   :  { %v25_v1 = vld [vmem:[%s5185_s2] sm:$0xff]  ;;  %v26_v4 = vld [vmem:[%s5185_s2 + $0x8] sm:$0xff]  ;;  %v28_v6 = vld [vmem:[%s5185_s2 + $0x18] sm:$0xff] }
   0x3   :  { %v4108_v3 = vadd.f32 %v25_v1, %v21_v0  ;;  %v4119_v7 = vadd.f32 %v26_v4, %v22_v2  ;;  %v4121_v8 = vadd.f32 %v28_v6, %v24_v5  ;;  %v23_v9 = vld [vmem:[%s5183_s0 + $0x10] sm:$0xff] }
   0x4   :  { %v27_v10 = vld [vmem:[%s5185_s2 + $0x10] sm:$0xff] }
   0x5   :  { %10 = vsyncpa [#allocation4], 0  ;;  %v137_v11 = vsel %vm136_vm0, %v4108_v3, 0.0  ;;  %v4131_v12 = vadd.f32 %v27_v10, %v23_v9  ;;  %v140_v13 = vsel %vm136_vm0, %v4119_v7, 0.0  ;;  %v146_v14 = vsel %vm136_vm0, %v4121_v8, 0.0  ;;  %v4162_v36 = vld [vmem:[%s5186_s3 + $0x8] sm:$0xff] }
   0x6   :  { %138 = vadd.xlane.f32.xlu0 %v137_v11  ;;  %141 = vadd.xlane.f32.xlu1 %v140_v13  ;;  %v4167_v37 = vld [vmem:[%s5186_s3 + $0x18] sm:$0xff]  ;;  %v4172_v38 = vld [vmem:[%s5186_s3 + $0x28] sm:$0xff]  ;;  %v33_v50 = vlaneseq  ;;  %v3253_v60 = vld [vmem:[%s5187_s4] ss:$0 sm:$0xff]  ;;  %s4052_s2 = smov 96   ;;  %s4053_s13 = smov 32  }
   0x7   :  { %v143_v15 = vsel %vm136_vm0, %v4131_v12, 0.0  ;;  %v3663_v40 = vpack.c.bf16 %v4167_v37, %v4162_v36  ;;  %v4181_v41 = vld [vmem:[%s5186_s3 + $0x38] sm:$0xff]  ;;  %v3254_v4 = vld [vmem:[%s5187_s4 + $0x4] ss:$0 sm:$0xff]  ;;  %s4054_s20 = smov 88   ;;  %s4055_s21 = smov 80  }
   0x8   :  { %v3667_v42 = vpack.c.bf16 %v4181_v41, %v4172_v38  ;;  %v4185_v55 = vshrl.u32 %v33_v50, 7  ;;  %s4056_s22 = smov 120   ;;  %s4057_s23 = smov 112  }
   0x9   :  { %3664 = vmatprep.subr.bf16.mxu0 %v3663_v40  ;;  %s4058_s28 = smov 64   ;;  %s4059_s29 = smov 56  }
   0xa   :  { %147 = vadd.xlane.f32.xlu0 %v146_v14  ;;  %144 = vadd.xlane.f32.xlu1 %v143_v15  ;;  %v42_v57 = vand.u32 15, %v4185_v55  ;;  %v35_v58 = vadd.s32 8, %v4185_v55  ;;  %v36_v63 = vadd.s32 16, %v4185_v55  ;;  %v37_v2 = vadd.s32 24, %v4185_v55  ;;  %s4060_s30 = smov 48   ;;  %s4061_s6 = smov 72  }
   0xb   :  { %3666 = vmatpush3.bf16.msra.mxu0 %v3663_v40  ;;  %vm211_vm1 = vcmp.lt.s32.totalorder %v4185_v55, 3  ;;  %vm245_vm2 = vcmp.lt.s32.totalorder %v4185_v55, 2  ;;  %vm279_vm5 = vcmp.lt.s32.totalorder %v4185_v55, 1  ;;  %vm326_vm7 = vcmp.lt.s32.totalorder %v4185_v55, 7  ;;  %v4251_v40 = vld [vmem:[%s5187_s4 + $0x8] ss:$0 sm:$0xff] }
   0xc   :  { %3668 = vmatprep.subr.bf16.mxu0 %v3667_v42  ;;  %v4192_v61 = vadd.s32 4294967293, %v42_v57  ;;  %v4194_v62 = vadd.s32 4294967294, %v42_v57  ;;  %v4197_v1 = vadd.s32 4294967295, %v42_v57  ;;  %v49_v5 = vand.u32 15, %v35_v58  ;;  %s4062_s7 = smov 104   ;;  %s4064_s0 = smov 8  }
   0xd   :  { %v56_v10 = vand.u32 15, %v36_v63  ;;  %v4212_v15 = vand.u32 15, %v37_v2  ;;  %vm360_vm8 = vcmp.lt.s32.totalorder %v4185_v55, 6  ;;  %vm394_vm9 = vcmp.lt.s32.totalorder %v4185_v55, 5  ;;  %s4065_s9 = smov 16   ;;  %s4066_s15 = smov 24  }
   0xe   :  { %vm90_vm3 = vcmp.ge.s32.totalorder %v4192_v61, 0  ;;  %vm98_vm4 = vcmp.ge.s32.totalorder %v4194_v62, 0  ;;  %vm106_vm6 = vcmp.ge.s32.totalorder %v4197_v1, 0  ;;  %v4601_v61 = vld [vmem:[%s5187_s4 + $0x14] ss:$0 sm:$0xff] }
   0xf   :  { %3670 = vmatpush3.bf16.msra.mxu0 %v3667_v42 }
  0x93   :  { %v139_v16 = vpop.xlane.xlu0 %138  ;;  %v142_v18 = vpop.xlane.xlu1 %141 }
  0x94   :  { %v150_v17 = vmul.f32 0.03125, %v139_v16  ;;  %v151_v19 = vmul.f32 0.03125, %v142_v18 }
  0x96   :  { %v154_v20 = vsub.f32 %v4108_v3, %v150_v17  ;;  %v4141_v21 = vsub.f32 %v4119_v7, %v151_v19  ;;  %v4217_v17 = vadd.s32 1, %v49_v5  ;;  %v4220_v19 = vadd.s32 2, %v49_v5 }
  0x97   :  { %v148_v22 = vpop.xlane.xlu0 %147  ;;  %v145_v24 = vpop.xlane.xlu1 %144 }
  0x98   :  { %v153_v23 = vmul.f32 0.03125, %v148_v22  ;;  %v158_v25 = vmul.f32 %v154_v20, %v154_v20  ;;  %v152_v26 = vmul.f32 0.03125, %v145_v24  ;;  %v159_v27 = vmul.f32 %v4141_v21, %v4141_v21 }
  0x99   :  { %v4224_v24 = vadd.s32 4294967293, %v56_v10  ;;  %vm115_vm10 = vcmp.lt.s32.totalorder %v4217_v17, 16  ;;  %vm123_vm11 = vcmp.lt.s32.totalorder %v4220_v19, 16 }
  0x9a   :  { %v4146_v28 = vsub.f32 %v4121_v8, %v153_v23  ;;  %v162_v29 = vsel %vm136_vm0, %v158_v25, 0.0  ;;  %v4150_v30 = vsub.f32 %v4131_v12, %v152_v26  ;;  %v165_v31 = vsel %vm136_vm0, %v159_v27, 0.0 }
  0x9b   :  { %163 = vadd.xlane.f32.xlu0 %v162_v29  ;;  %v4226_v25 = vadd.s32 4294967294, %v56_v10  ;;  %v4235_v29 = vadd.s32 1, %v4212_v15  ;;  %vm5191_vm12 = vcmp.ge.s32.totalorder %v4224_v24, 0 }
  0x9c   :  { %v161_v32 = vmul.f32 %v4146_v28, %v4146_v28  ;;  %v160_v33 = vmul.f32 %v4150_v30, %v4150_v30 }
  0x9d   :  { %vm5189_vm13 = vcmp.ge.s32.totalorder %v4226_v25, 0 }
  0x9e   :  { %v171_v34 = vsel %vm136_vm0, %v161_v32, 0.0  ;;  %v168_v35 = vsel %vm136_vm0, %v160_v33, 0.0 }
  0x9f   :  { %166 = vadd.xlane.f32.xlu0 %v165_v31  ;;  %172 = vadd.xlane.f32.xlu1 %v171_v34  ;;  %v4244_v34 = vld [vmem:[%s5187_s4 + $0xb] ss:$0 sm:$0xff] }
  0xa3   :  { %169 = vadd.xlane.f32.xlu1 %v168_v35 }
 0x128   :  { %v164_v43 = vpop.xlane.xlu0 %163 }
 0x129   :  { %v174_v44 = vmul.f32 0.03125, %v164_v43 }
 0x12b   :  { %v178_v45 = vadd.f32 1e-05, %v174_v44 }
 0x12c   :  { %v173_v46 = vpop.xlane.xlu1 %172  ;;  %v167_v47 = vpop.xlane.xlu0 %166 }
 0x12d   :  { %3928 = vrsqrt.f32 %v178_v45  ;;  %v177_v48 = vmul.f32 0.03125, %v173_v46  ;;  %v175_v49 = vmul.f32 0.03125, %v167_v47  ;;  %v4259_v45 = vld [vmem:[%s5187_s4 + $0x9] ss:$0 sm:$0xff] }
 0x12f   :  { %v181_v51 = vadd.f32 1e-05, %v177_v48  ;;  %v179_v52 = vadd.f32 1e-05, %v175_v49 }
 0x130   :  { %v170_v53 = vpop.xlane.xlu1 %169 }
 0x131   :  { %3930 = vrsqrt.f32 %v181_v51  ;;  %v176_v54 = vmul.f32 0.03125, %v170_v53  ;;  %v4278_v53 = vld [vmem:[%s5187_s4 + $0xa] ss:$0 sm:$0xff] }
 0x132   :  { %3932 = vrsqrt.f32 %v179_v52 }
 0x133   :  { %v180_v56 = vadd.f32 1e-05, %v176_v54 }
 0x135   :  { %3934 = vrsqrt.f32 %v180_v56 }
 0x137   :  { %v3929_v59 = vpop.eup %3928 }
 0x138   :  { %v186_v0 = vmul.f32 %v3929_v59, %v154_v20  ;;  %v4222_v20 = vadd.s32 3, %v49_v5  ;;  %v4295_v59 = vld [vmem:[%s5187_s4 + $0xc] ss:$0 sm:$0xff] }
 0x13a   :  { %v194_v6 = vmul.f32 %v3253_v60, %v186_v0  ;;  %vm131_vm14 = vcmp.lt.s32.totalorder %v4222_v20, 16 }
 0x13b   :  { %v3931_v9 = vpop.eup %3930 }
 0x13c   :  { %v3933_v11 = vpop.eup %3932  ;;  %v4208_v13 = vadd.f32 %v3254_v4, %v194_v6  ;;  %v189_v14 = vmul.f32 %v3931_v9, %v4146_v28 }
 0x13d   :  { %v187_v16 = vmul.f32 %v3933_v11, %v4141_v21  ;;  %v4228_v21 = vadd.s32 4294967295, %v56_v10 }
 0x13e   :  { %v197_v18 = vmul.f32 %v3253_v60, %v189_v14  ;;  %v207_v28 = vrot.slane %v4208_v13, 5  ;;  %v241_v32 = vrot.slane %v4208_v13, 6  ;;  %v275_v33 = vrot.slane %v4208_v13, 7 }
 0x13f   :  { %v3935_v22 = vpop.eup %3934  ;;  %v195_v23 = vmul.f32 %v3253_v60, %v187_v16  ;;  %v322_v35 = vrot.slane %v4208_v13, 1  ;;  %v313_v2 = vmul.f32 %v4244_v34, %v4208_v13  ;;  %v390_v6 = vrot.slane %v4208_v13, 3 }
 0x140   :  { %v4230_v26 = vadd.f32 %v3254_v4, %v197_v18  ;;  %v188_v27 = vmul.f32 %v3935_v22, %v4150_v30  ;;  %vm5190_vm15 = vcmp.ge.s32.totalorder %v4228_v21, 0 }
 0x141   :  { %v4237_v31 = vadd.f32 %v3254_v4, %v195_v23 }
 0x142   :  { %v196_v30 = vmul.f32 %v3253_v60, %v188_v27  ;;  %v210_v42 = vrot.slane %v4230_v26, 5  ;;  %v244_v43 = vrot.slane %v4230_v26, 6  ;;  %v278_v44 = vrot.slane %v4230_v26, 7 }
 0x143   :  { %v323_v46 = vrot.slane %v4237_v31, 1  ;;  %v357_v47 = vrot.slane %v4237_v31, 2  ;;  %v391_v48 = vrot.slane %v4237_v31, 3  ;;  %v208_v49 = vrot.slane %v4237_v31, 5 }
 0x144   :  { %v4265_v50 = vadd.f32 %v3254_v4, %v196_v30  ;;  %v215_v51 = vsel %vm211_vm1, %v210_v42, %v207_v28  ;;  %v249_v52 = vsel %vm245_vm2, %v244_v43, %v241_v32  ;;  %v283_v54 = vsel %vm279_vm5, %v278_v44, %v275_v33 }
 0x145   :  { %v224_v56 = vsel %vm90_vm3, %v215_v51, 0.0  ;;  %v258_v57 = vsel %vm98_vm4, %v249_v52, 0.0  ;;  %v292_v58 = vsel %vm106_vm6, %v283_v54, 0.0  ;;  %v329_v60 = vsel %vm326_vm7, %v322_v35, %v323_v46  ;;  %v4331_v51 = vld [vmem:[%s5187_s4 + $0xd] ss:$0 sm:$0xff] }
 0x146   :  { %v232_v63 = vmul.f32 %v4251_v40, %v224_v56  ;;  %v266_v0 = vmul.f32 %v4259_v45, %v258_v57  ;;  %v356_v4 = vrot.slane %v4208_v13, 2  ;;  %v300_v5 = vmul.f32 %v4278_v53, %v292_v58 }
 0x147   :  { %v214_v9 = vsel %vm211_vm1, %v207_v28, %v208_v49  ;;  %v242_v10 = vrot.slane %v4237_v31, 6  ;;  %v347_v14 = vmul.f32 %v4295_v59, %v329_v60  ;;  %v397_v22 = vsel %vm394_vm9, %v390_v6, %v391_v48 }
 0x148   :  { %v270_v11 = vadd.f32 %v266_v0, %v232_v63  ;;  %v363_v16 = vsel %vm360_vm8, %v356_v4, %v357_v47  ;;  %v233_v18 = vmul.f32 %v4251_v40, %v214_v9  ;;  %v276_v27 = vrot.slane %v4237_v31, 7  ;;  %v4345_v0 = vld [vmem:[%s5187_s4 + $0xe] ss:$0 sm:$0xff] }
 0x149   :  { %v248_v23 = vsel %vm245_vm2, %v241_v32, %v242_v10  ;;  %v324_v28 = vrot.slane %v4265_v50, 1  ;;  %v358_v54 = vrot.slane %v4265_v50, 2  ;;  %v392_v56 = vrot.slane %v4265_v50, 3 }
 0x14a   :  { %v304_v30 = vadd.f32 %v300_v5, %v270_v11  ;;  %v267_v52 = vmul.f32 %v4259_v45, %v248_v23  ;;  %v282_v32 = vsel %vm279_vm5, %v275_v33, %v276_v27  ;;  %v209_v58 = vrot.slane %v4265_v50, 5 }
 0x14b   :  { %v328_v57 = vsel %vm326_vm7, %v323_v46, %v324_v28  ;;  %v243_v60 = vrot.slane %v4265_v50, 6  ;;  %v301_v9 = vmul.f32 %v4278_v53, %v282_v32  ;;  %v381_v33 = vmul.f32 %v4331_v51, %v363_v16 }
 0x14c   :  { %v317_v63 = vadd.f32 %v313_v2, %v304_v30  ;;  %v271_v5 = vadd.f32 %v267_v52, %v233_v18  ;;  %v340_v11 = vsel %vm115_vm10, %v328_v57, 0.0  ;;  %v314_v46 = vmul.f32 %v4244_v34, %v4237_v31 }
 0x14d   :  { %v362_v23 = vsel %vm360_vm8, %v357_v47, %v358_v54  ;;  %v213_v2 = vsel %vm211_vm1, %v208_v49, %v209_v58  ;;  %v348_v18 = vmul.f32 %v4295_v59, %v340_v11  ;;  %v396_v52 = vsel %vm394_vm9, %v391_v48, %v392_v56 }
 0x14e   :  { %v351_v30 = vadd.f32 %v347_v14, %v317_v63  ;;  %v305_v39 = vadd.f32 %v301_v9, %v271_v5  ;;  %v415_v16 = vmul.f32 %v4345_v0, %v397_v22  ;;  %v374_v31 = vsel %vm123_vm11, %v362_v23, 0.0 }
 0x14f   :  { %v226_v47 = vsel %vm5191_vm12, %v213_v2, 0.0  ;;  %v247_v49 = vsel %vm245_vm2, %v242_v10, %v243_v60  ;;  %v408_v48 = vsel %vm131_vm14, %v396_v52, 0.0  ;;  %v277_v5 = vrot.slane %v4265_v50, 7 }
 0x150   :  { %v385_v14 = vadd.f32 %v381_v33, %v351_v30  ;;  %v318_v32 = vadd.f32 %v314_v46, %v305_v39  ;;  %v234_v57 = vmul.f32 %v4251_v40, %v226_v47  ;;  %v260_v63 = vsel %vm5189_vm13, %v247_v49, 0.0 }
 0x151   :  { %v268_v22 = vmul.f32 %v4259_v45, %v260_v63  ;;  %v4377_v9 = vadd.s32 2, %v4212_v15  ;;  %v382_v10 = vmul.f32 %v4331_v51, %v374_v31  ;;  %v4381_v39 = vadd.s32 3, %v4212_v15 }
 0x152   :  { %v419_v11 = vadd.f32 %v415_v16, %v385_v14  ;;  %v352_v23 = vadd.f32 %v348_v18, %v318_v32  ;;  %v281_v46 = vsel %vm279_vm5, %v276_v27, %v277_v5  ;;  %v325_v2 = vrot.slane %v4230_v26, 1 }
 0x153   :  { %v272_v33 = vadd.f32 %v268_v22, %v234_v57  ;;  %v212_v30 = vsel %vm211_vm1, %v209_v58, %v210_v42  ;;  %v416_v18 = vmul.f32 %v4345_v0, %v408_v48  ;;  %v294_v15 = vsel %vm5190_vm15, %v281_v46, 0.0 }
 0x154   :  { %3475 = vmatprep.mubr.msk.f32.mxu0 %vm136_vm0, %v419_v11  ;;  %v386_v52 = vadd.f32 %v382_v10, %v352_v23  ;;  %vm117_vm13 = vcmp.lt.s32.totalorder %v4235_v29, 16  ;;  %v302_v16 = vmul.f32 %v4278_v53, %v294_v15  ;;  %v327_v27 = vsel %vm326_vm7, %v324_v28, %v325_v2 }
 0x155   :  { %v359_v31 = vrot.slane %v4230_v26, 2  ;;  %v235_v47 = vmul.f32 %v4251_v40, %v212_v30  ;;  %v315_v58 = vmul.f32 %v4244_v34, %v4265_v50  ;;  %v246_v49 = vsel %vm245_vm2, %v243_v60, %v244_v43 }
 0x156   :  { %v420_v42 = vadd.f32 %v416_v18, %v386_v52  ;;  %v280_v14 = vsel %vm279_vm5, %v277_v5, %v278_v44  ;;  %v306_v32 = vadd.f32 %v302_v16, %v272_v33  ;;  %v393_v40 = vrot.slane %v4230_v26, 3  ;;  %v3262_v52 = vld [vmem:[%s5187_s4 + $0x16] ss:$0 sm:$0xff] }
 0x157   :  { %v361_v28 = vsel %vm360_vm8, %v358_v54, %v359_v31  ;;  %v269_v57 = vmul.f32 %v4259_v45, %v246_v49  ;;  %v349_v63 = vmul.f32 %v4295_v59, %v327_v27  ;;  %vm125_vm15 = vcmp.lt.s32.totalorder %v4377_v9, 16  ;;  %v3276_v9 = vld [vmem:[%s5187_s4 + $0x17] ss:$0 sm:$0xff] }
 0x158   :  { %3476 = vmatmul.mubr.msk.f32.vlgmr.msra.gmra.mrb[0].mxu0 %vm136_vm0, %v420_v42  ;;  %v330_v43 = vsel %vm326_vm7, %v325_v2, %v322_v35  ;;  %v319_v44 = vadd.f32 %v315_v58, %v306_v32  ;;  %v303_v48 = vmul.f32 %v4278_v53, %v280_v14  ;;  %v364_v45 = vsel %vm360_vm8, %v359_v31, %v356_v4 }
 0x159   :  { %v273_v60 = vadd.f32 %v269_v57, %v235_v47  ;;  %v383_v54 = vmul.f32 %v4331_v51, %v361_v28  ;;  %v395_v22 = vsel %vm394_vm9, %v392_v56, %v393_v40  ;;  %vm133_vm12 = vcmp.lt.s32.totalorder %v4381_v39, 16 }
 0x15a   :  { %v342_v35 = vsel %vm117_vm13, %v330_v43, 0.0  ;;  %v353_v5 = vadd.f32 %v349_v63, %v319_v44  ;;  %v316_v53 = vmul.f32 %v4244_v34, %v4230_v26  ;;  %v398_v4 = vsel %vm394_vm9, %v393_v40, %v390_v6 }
 0x15b   :  { %v307_v11 = vadd.f32 %v303_v48, %v273_v60  ;;  %v376_v50 = vsel %vm125_vm15, %v364_v45, 0.0  ;;  %v417_v56 = vmul.f32 %v4345_v0, %v395_v22  ;;  %v350_v33 = vmul.f32 %v4295_v59, %v342_v35 }
 0x15c   :  { %v387_v23 = vadd.f32 %v383_v54, %v353_v5  ;;  %v410_v46 = vsel %vm133_vm12, %v398_v4, 0.0  ;;  %v384_v26 = vmul.f32 %v4331_v51, %v376_v50 }
 0x15d   :  { %v320_v10 = vadd.f32 %v316_v53, %v307_v11  ;;  %v418_v34 = vmul.f32 %v4345_v0, %v410_v46 }
 0x15e   :  { %v421_v2 = vadd.f32 %v417_v56, %v387_v23 }
 0x15f   :  { %v354_v30 = vadd.f32 %v350_v33, %v320_v10 }
 0x160   :  { %3478 = vmatprep.mubr.msk.f32.mxu0 %vm136_vm0, %v421_v2  ;;  %v5192_v2 = vpack.i.bf16 %v4167_v37, %v4162_v36 }
 0x161   :  { %v388_v13 = vadd.f32 %v384_v26, %v354_v30  ;;  %v3813_v30 = vpack.i.bf16 %v4181_v41, %v4172_v38  ;;  %v3267_v41 = vld [vmem:[%s5187_s4 + $0x1] ss:$0 sm:$0xff] }
 0x163   :  { %v422_v6 = vadd.f32 %v418_v34, %v388_v13 }
 0x165   :  { %3479 = vmatmul.mubr.msk.f32.gmra.mrb[2].mxu0 %vm136_vm0, %v422_v6 }
 0x22b   :  { %v3477_v59 = vpop.f32.mrb[0].mxu0 }
 0x22c   :  { %v516_v18 = vadd.f32 %v3477_v59, %v3262_v52  ;;  %v510_v15 = vpop.f32.mrb[1].mxu0 }
 0x22d   :  { %v511_v16 = vadd.f32 %v3262_v52, %v510_v15 }
 0x22e   :  { %v530_v27 = vmax.f32 %v516_v18, 0.0 }
 0x22f   :  { %v529_v31 = vmax.f32 %v511_v16, 0.0 }
 0x230   :  { %v4457_v47 = vadd.f32 %v530_v27, %v4119_v7 }
 0x231   :  { %v4454_v51 = vadd.f32 %v529_v31, %v4108_v3 }
 0x232   :  { %v542_v42 = vsel %vm136_vm0, %v4457_v47, 0.0 }
 0x233   :  { %v539_v0 = vsel %vm136_vm0, %v4454_v51, 0.0 }
 0x234   :  { %540 = vadd.xlane.f32.xlu0 %v539_v0 }
 0x238   :  { %v3480_v58 = vpop.f32.mrb[2].mxu0  ;;  %543 = vadd.xlane.f32.xlu0 %v542_v42 }
 0x239   :  { %v526_v49 = vadd.f32 %v3480_v58, %v3262_v52  ;;  %v520_v14 = vpop.f32.mrb[3].mxu0 }
 0x23a   :  { %v521_v32 = vadd.f32 %v3262_v52, %v520_v14 }
 0x23b   :  { %v532_v28 = vmax.f32 %v526_v49, 0.0 }
 0x23c   :  { %v531_v40 = vmax.f32 %v521_v32, 0.0 }
 0x23d   :  { %v4464_v3 = vadd.f32 %v532_v28, %v4121_v8  ;;  %v3268_v28 = vld [vmem:[%s5187_s4 + $0x5] ss:$0 sm:$0xff] }
 0x23e   :  { %v4467_v7 = vadd.f32 %v531_v40, %v4131_v12 }
 0x23f   :  { %v548_v57 = vsel %vm136_vm0, %v4464_v3, 0.0 }
 0x240   :  { %549 = vadd.xlane.f32.xlu1 %v548_v57  ;;  %v545_v63 = vsel %vm136_vm0, %v4467_v7, 0.0 }
 0x244   :  { %546 = vadd.xlane.f32.xlu1 %v545_v63 }
 0x2c1   :  { %v541_v43 = vpop.xlane.xlu0 %540 }
 0x2c2   :  { %v551_v44 = vmul.f32 0.03125, %v541_v43 }
 0x2c4   :  { %v555_v60 = vsub.f32 %v4454_v51, %v551_v44 }
 0x2c5   :  { %v544_v48 = vpop.xlane.xlu0 %543 }
 0x2c6   :  { %v552_v45 = vmul.f32 0.03125, %v544_v48  ;;  %v559_v54 = vmul.f32 %v555_v60, %v555_v60 }
 0x2c8   :  { %v556_v8 = vsub.f32 %v4457_v47, %v552_v45  ;;  %v563_v12 = vsel %vm136_vm0, %v559_v54, 0.0 }
 0x2c9   :  { %564 = vadd.xlane.f32.xlu0 %v563_v12 }
 0x2ca   :  { %v560_v22 = vmul.f32 %v556_v8, %v556_v8 }
 0x2cc   :  { %v566_v35 = vsel %vm136_vm0, %v560_v22, 0.0  ;;  %v4506_v22 = vld [vmem:[%s5187_s4 + $0xf] ss:$0 sm:$0xff] }
 0x2cd   :  { %v550_v5 = vpop.xlane.xlu1 %549  ;;  %567 = vadd.xlane.f32.xlu0 %v566_v35 }
 0x2ce   :  { %v554_v11 = vmul.f32 0.03125, %v550_v5 }
 0x2d0   :  { %v558_v53 = vsub.f32 %v4464_v3, %v554_v11 }
 0x2d1   :  { %v547_v4 = vpop.xlane.xlu1 %546 }
 0x2d2   :  { %v553_v50 = vmul.f32 0.03125, %v547_v4  ;;  %v562_v23 = vmul.f32 %v558_v53, %v558_v53  ;;  %v4514_v4 = vld [vmem:[%s5187_s4 + $0x10] ss:$0 sm:$0xff] }
 0x2d4   :  { %v4479_v56 = vsub.f32 %v4467_v7, %v553_v50  ;;  %v572_v10 = vsel %vm136_vm0, %v562_v23, 0.0 }
 0x2d5   :  { %573 = vadd.xlane.f32.xlu1 %v572_v10  ;;  %v4521_v10 = vld [vmem:[%s5187_s4 + $0x12] ss:$0 sm:$0xff] }
 0x2d6   :  { %v561_v33 = vmul.f32 %v4479_v56, %v4479_v56 }
 0x2d8   :  { %v569_v46 = vsel %vm136_vm0, %v561_v33, 0.0 }
 0x2d9   :  { %570 = vadd.xlane.f32.xlu1 %v569_v46 }
 0x2e3   :  { %3809 = vrot.lane.b32.xlu0 %v5192_v2, %s4052_s2  ;;  %v4531_v2 = vld [vmem:[%s5187_s4 + $0x11] ss:$0 sm:$0xff] }
 0x2ea   :  { %3814 = vrot.lane.b32.xlu1 %v3813_v30, %s4052_s2 }
 0x356   :  { %v565_v26 = vpop.xlane.xlu0 %564 }
 0x357   :  { %v575_v13 = vmul.f32 0.03125, %v565_v26 }
 0x359   :  { %v579_v34 = vadd.f32 1e-05, %v575_v13 }
 0x35a   :  { %v568_v6 = vpop.xlane.xlu0 %567 }
 0x35b   :  { %3936 = vrsqrt.f32 %v579_v34  ;;  %v576_v52 = vmul.f32 0.03125, %v568_v6 }
 0x35d   :  { %v580_v59 = vadd.f32 1e-05, %v576_v52 }
 0x35e   :  { %v3810_v18 = vpop.permute.xlu0 %3809 }
 0x35f   :  { %3938 = vrsqrt.f32 %v580_v59  ;;  %v3812_v15 = vunpack.i.h.bf16 %v3810_v18  ;;  %v3811_v16 = vunpack.i.l.bf16 %v3810_v18 }
 0x361   :  { %v3671_v27 = vpack.c.bf16 %v3812_v15, %v3811_v16 }
 0x362   :  { %v574_v31 = vpop.xlane.xlu1 %573 }
 0x363   :  { %v578_v36 = vmul.f32 0.03125, %v574_v31  ;;  %3672 = vmatprep.subr.bf16.mxu1 %v3671_v27 }
 0x364   :  { %3674 = vmatpush3.bf16.msra.mxu1 %v3671_v27 }
 0x365   :  { %v3937_v37 = vpop.eup %3936  ;;  %v582_v38 = vadd.f32 1e-05, %v578_v36 }
 0x366   :  { %v587_v0 = vmul.f32 %v3937_v37, %v555_v60  ;;  %v571_v42 = vpop.xlane.xlu1 %570 }
 0x367   :  { %3940 = vrsqrt.f32 %v582_v38  ;;  %v577_v58 = vmul.f32 0.03125, %v571_v42 }
 0x368   :  { %v595_v14 = vmul.f32 %v3267_v41, %v587_v0 }
 0x369   :  { %v3939_v49 = vpop.eup %3938  ;;  %v581_v32 = vadd.f32 1e-05, %v577_v58 }
 0x36a   :  { %v588_v40 = vmul.f32 %v3939_v49, %v556_v8  ;;  %v3815_v57 = vpop.permute.xlu1 %3814  ;;  %v4498_v48 = vadd.f32 %v3268_v28, %v595_v14  ;;  %v4564_v14 = vld [vmem:[%s5187_s4 + $0x13] ss:$0 sm:$0xff] }
 0x36b   :  { %3942 = vrsqrt.f32 %v581_v32  ;;  %v3817_v63 = vunpack.i.h.bf16 %v3815_v57  ;;  %v3816_v43 = vunpack.i.l.bf16 %v3815_v57 }
 0x36c   :  { %v596_v44 = vmul.f32 %v3267_v41, %v588_v40  ;;  %v608_v8 = vrot.slane %v4498_v48, 5  ;;  %v633_v50 = vrot.slane %v4498_v48, 6  ;;  %v658_v23 = vrot.slane %v4498_v48, 7 }
 0x36d   :  { %v3675_v45 = vpack.c.bf16 %v3817_v63, %v3816_v43  ;;  %v696_v6 = vrot.slane %v4498_v48, 1  ;;  %v687_v27 = vmul.f32 %v4521_v10, %v4498_v48  ;;  %v721_v31 = vrot.slane %v4498_v48, 2 }
 0x36e   :  { %v4500_v60 = vadd.f32 %v3268_v28, %v596_v44  ;;  %v746_v37 = vrot.slane %v4498_v48, 3 }
 0x36f   :  { %3676 = vmatprep.subr.bf16.mxu1 %v3675_v45 }
 0x370   :  { %3678 = vmatpush3.bf16.msra.mxu1 %v3675_v45  ;;  %v609_v54 = vrot.slane %v4500_v60, 5  ;;  %v634_v35 = vrot.slane %v4500_v60, 6  ;;  %v659_v5 = vrot.slane %v4500_v60, 7  ;;  %v697_v33 = vrot.slane %v4500_v60, 1 }
 0x371   :  { %v3941_v12 = vpop.eup %3940  ;;  %v722_v52 = vrot.slane %v4500_v60, 2  ;;  %v747_v59 = vrot.slane %v4500_v60, 3  ;;  %v688_v57 = vmul.f32 %v4521_v10, %v4500_v60 }
 0x372   :  { %v590_v11 = vmul.f32 %v3941_v12, %v558_v53  ;;  %v614_v53 = vsel %vm211_vm1, %v608_v8, %v609_v54  ;;  %v639_v26 = vsel %vm245_vm2, %v633_v50, %v634_v35  ;;  %v664_v13 = vsel %vm279_vm5, %v658_v23, %v659_v5 }
 0x373   :  { %v625_v30 = vmul.f32 %v4506_v22, %v614_v53  ;;  %v650_v18 = vmul.f32 %v4514_v4, %v639_v26  ;;  %v702_v36 = vsel %vm326_vm7, %v696_v6, %v697_v33  ;;  %v675_v0 = vmul.f32 %v4531_v2, %v664_v13 }
 0x374   :  { %v598_v46 = vmul.f32 %v3267_v41, %v590_v11  ;;  %v727_v32 = vsel %vm360_vm8, %v721_v31, %v722_v52 }
 0x375   :  { %v3943_v34 = vpop.eup %3942  ;;  %v654_v38 = vadd.f32 %v650_v18, %v625_v30 }
 0x376   :  { %v4546_v15 = vadd.f32 %v3268_v28, %v598_v46  ;;  %v589_v16 = vmul.f32 %v3943_v34, %v4479_v56 }
 0x377   :  { %v679_v40 = vadd.f32 %v675_v0, %v654_v38 }
 0x378   :  { %v597_v42 = vmul.f32 %v3267_v41, %v589_v16  ;;  %v611_v58 = vrot.slane %v4546_v15, 5  ;;  %v636_v56 = vrot.slane %v4546_v15, 6  ;;  %v661_v49 = vrot.slane %v4546_v15, 7 }
 0x379   :  { %v752_v41 = vsel %vm394_vm9, %v746_v37, %v747_v59  ;;  %v692_v46 = vadd.f32 %v688_v57, %v679_v40  ;;  %v737_v57 = vmul.f32 %v4601_v61, %v727_v32 }
 0x37a   :  { %v4576_v63 = vadd.f32 %v3268_v28, %v597_v42  ;;  %v615_v43 = vsel %vm211_vm1, %v611_v58, %v608_v8  ;;  %v640_v44 = vsel %vm245_vm2, %v636_v56, %v633_v50  ;;  %v665_v45 = vsel %vm279_vm5, %v661_v49, %v658_v23 }
 0x37b   :  { %v616_v12 = vsel %vm90_vm3, %v615_v43, 0.0  ;;  %v641_v28 = vsel %vm98_vm4, %v640_v44, 0.0  ;;  %v666_v11 = vsel %vm106_vm6, %v665_v45, 0.0  ;;  %v712_v8 = vmul.f32 %v4564_v14, %v702_v36 }
 0x37c   :  { %v624_v53 = vmul.f32 %v4506_v22, %v616_v12  ;;  %v649_v50 = vmul.f32 %v4514_v4, %v641_v28  ;;  %v698_v30 = vrot.slane %v4576_v63, 1  ;;  %v723_v62 = vrot.slane %v4576_v63, 2 }
 0x37d   :  { %v748_v23 = vrot.slane %v4576_v63, 3  ;;  %v610_v1 = vrot.slane %v4576_v63, 5  ;;  %v635_v26 = vrot.slane %v4576_v63, 6  ;;  %v674_v34 = vmul.f32 %v4531_v2, %v666_v11 }
 0x37e   :  { %v653_v13 = vadd.f32 %v649_v50, %v624_v53  ;;  %v701_v18 = vsel %vm326_vm7, %v697_v33, %v698_v30  ;;  %v660_v16 = vrot.slane %v4576_v63, 7  ;;  %v726_v38 = vsel %vm360_vm8, %v722_v52, %v723_v62  ;;  %v3275_v33 = vld [vmem:[%s5187_s4 + $0x15] ss:$0 sm:$0xff] }
 0x37f   :  { %v705_v36 = vsel %vm115_vm10, %v701_v18, 0.0  ;;  %v751_v0 = vsel %vm394_vm9, %v747_v59, %v748_v23  ;;  %v613_v42 = vsel %vm211_vm1, %v609_v54, %v610_v1  ;;  %v730_v52 = vsel %vm123_vm11, %v726_v38, 0.0 }
 0x380   :  { %v678_v40 = vadd.f32 %v674_v34, %v653_v13  ;;  %v713_v17 = vmul.f32 %v4564_v14, %v705_v36  ;;  %v738_v43 = vmul.f32 %v4601_v61, %v730_v52  ;;  %v755_v59 = vsel %vm131_vm14, %v751_v0, 0.0 }
 0x381   :  { %vm5193_vm3 = vcmp.ge.s32.totalorder %v4224_v24, 0  ;;  %v638_v32 = vsel %vm245_vm2, %v634_v35, %v635_v26  ;;  %vm5194_vm4 = vcmp.ge.s32.totalorder %v4226_v25, 0  ;;  %v762_v28 = vmul.f32 %v3275_v33, %v752_v41 }
 0x382   :  { %v618_v54 = vsel %vm5193_vm3, %v613_v42, 0.0  ;;  %v691_v44 = vadd.f32 %v687_v27, %v678_v40  ;;  %v717_v45 = vadd.f32 %v713_v17, %v692_v46  ;;  %v643_v19 = vsel %vm5194_vm4, %v638_v32, 0.0 }
 0x383   :  { %v626_v12 = vmul.f32 %v4506_v22, %v618_v54  ;;  %v651_v11 = vmul.f32 %v4514_v4, %v643_v19  ;;  %v663_v20 = vsel %vm279_vm5, %v659_v5, %v660_v16  ;;  %v699_v24 = vrot.slane %v4546_v15, 1 }
 0x384   :  { %v716_v53 = vadd.f32 %v712_v8, %v691_v44  ;;  %v742_v50 = vadd.f32 %v738_v43, %v717_v45  ;;  %v763_v35 = vmul.f32 %v3275_v33, %v755_v59  ;;  %vm5195_vm6 = vcmp.ge.s32.totalorder %v4228_v21, 0 }
 0x385   :  { %v668_v27 = vsel %vm5195_vm6, %v663_v20, 0.0  ;;  %v655_v46 = vadd.f32 %v651_v11, %v626_v12  ;;  %v689_v41 = vmul.f32 %v4521_v10, %v4576_v63  ;;  %v724_v13 = vrot.slane %v4546_v15, 2 }
 0x386   :  { %v676_v25 = vmul.f32 %v4531_v2, %v668_v27  ;;  %v741_v60 = vadd.f32 %v737_v57, %v716_v53  ;;  %v767_v34 = vadd.f32 %v763_v35, %v742_v50  ;;  %v700_v5 = vsel %vm326_vm7, %v698_v30, %v699_v24 }
 0x387   :  { %v612_v8 = vsel %vm211_vm1, %v610_v1, %v611_v58  ;;  %v637_v36 = vsel %vm245_vm2, %v635_v26, %v636_v56  ;;  %v662_v63 = vsel %vm279_vm5, %v660_v16, %v661_v49  ;;  %v725_v30 = vsel %vm360_vm8, %v723_v62, %v724_v13 }
 0x388   :  { %v680_v18 = vadd.f32 %v676_v25, %v655_v46  ;;  %v627_v21 = vmul.f32 %v4506_v22, %v612_v8  ;;  %v766_v38 = vadd.f32 %v762_v28, %v741_v60  ;;  %v749_v0 = vrot.slane %v4546_v15, 3 }
 0x389   :  { %v652_v58 = vmul.f32 %v4514_v4, %v637_v36  ;;  %v714_v22 = vmul.f32 %v4564_v14, %v700_v5  ;;  %v703_v56 = vsel %vm326_vm7, %v699_v24, %v696_v6  ;;  %v677_v62 = vmul.f32 %v4531_v2, %v662_v63  ;;  %v968_v63 = vld [vmem:[%s5186_s3 + $0x20] sm:$0xff] }
 0x38a   :  { %v693_v1 = vadd.f32 %v689_v41, %v680_v18  ;;  %3489 = vmatprep.mubr.msk.f32.mxu1 %vm136_vm0, %v766_v38  ;;  %v750_v49 = vsel %vm394_vm9, %v748_v23, %v749_v0  ;;  %v728_v4 = vsel %vm360_vm8, %v724_v13, %v721_v31  ;;  %v739_v42 = vmul.f32 %v4601_v61, %v725_v30  ;;  %v969_v30 = vld [vmem:[%s5186_s3 + $0x30] sm:$0xff] }
 0x38b   :  { %v656_v26 = vadd.f32 %v652_v58, %v627_v21  ;;  %3490 = vmatmul.mubr.msk.f32.vlgmr.msra.gmra.mrb[0].mxu1 %vm136_vm0, %v767_v34  ;;  %v707_v6 = vsel %vm117_vm13, %v703_v56, 0.0  ;;  %v690_v23 = vmul.f32 %v4521_v10, %v4546_v15  ;;  %v753_v2 = vsel %vm394_vm9, %v749_v0, %v746_v37  ;;  %v3288_v58 = vld [vmem:[%s5187_s4 + $0x19] ss:$0 sm:$0xff] }
 0x38c   :  { %v718_v16 = vadd.f32 %v714_v22, %v693_v1  ;;  %v764_v17 = vmul.f32 %v3275_v33, %v750_v49  ;;  %v732_v31 = vsel %vm125_vm15, %v728_v4, 0.0  ;;  %v715_v43 = vmul.f32 %v4564_v14, %v707_v6 }
 0x38d   :  { %v681_v40 = vadd.f32 %v677_v62, %v656_v26  ;;  %v757_v29 = vsel %vm133_vm12, %v753_v2, 0.0  ;;  %v740_v10 = vmul.f32 %v4601_v61, %v732_v31  ;;  %v3683_v0 = vpack.c.bf16 %v969_v30, %v968_v63 }
 0x38e   :  { %v743_v57 = vadd.f32 %v739_v42, %v718_v16  ;;  %v765_v15 = vmul.f32 %v3275_v33, %v757_v29  ;;  %vm1115_vm1 = vcmask 64512   ;;  %vm1201_vm5 = vcmask 130048  }
 0x38f   :  { %v694_v52 = vadd.f32 %v690_v23, %v681_v40  ;;  %vm4796_vm2 = vmpackc.low %vm1115_vm1, %vm1115_vm1  ;;  %vm1523_vm7 = vcmask 130112   ;;  %vm1734_vm8 = vcmask 195712   ;;  %vm1945_vm9 = vcmask 261312  }
 0x390   :  { %v768_v59 = vadd.f32 %v764_v17, %v743_v57 }
 0x391   :  { %v719_v54 = vadd.f32 %v715_v43, %v694_v52  ;;  %v3281_v43 = vld [vmem:[%s5187_s4 + $0x2] ss:$0 sm:$0xff] }
 0x392   :  { %3492 = vmatprep.mubr.msk.f32.mxu1 %vm136_vm0, %v768_v59 }
 0x393   :  { %v744_v48 = vadd.f32 %v740_v10, %v719_v54  ;;  %v3282_v10 = vld [vmem:[%s5187_s4 + $0x6] ss:$0 sm:$0xff] }
 0x395   :  { %v769_v37 = vadd.f32 %v765_v15, %v744_v48 }
 0x397   :  { %3493 = vmatmul.mubr.msk.f32.gmra.mrb[2].mxu1 %vm136_vm0, %v769_v37 }
 0x45e   :  { %v3491_v32 = vpop.f32.mrb[0].mxu1 }
 0x45f   :  { %v875_v14 = vadd.f32 %v3491_v32, %v3276_v9  ;;  %v869_v44 = vpop.f32.mrb[1].mxu1 }
 0x460   :  { %v870_v45 = vadd.f32 %v3276_v9, %v869_v44 }
 0x461   :  { %v889_v39 = vmax.f32 %v875_v14, 0.0 }
 0x462   :  { %v888_v12 = vmax.f32 %v870_v45, 0.0 }
 0x463   :  { %v4704_v19 = vadd.f32 %v889_v39, %v4457_v47 }
 0x464   :  { %v4707_v61 = vadd.f32 %v888_v12, %v4454_v51 }
 0x465   :  { %v901_v33 = vsel %vm136_vm0, %v4704_v19, 0.0 }
 0x466   :  { %902 = vadd.xlane.f32.xlu0 %v901_v33  ;;  %v898_v28 = vsel %vm136_vm0, %v4707_v61, 0.0 }
 0x467   :  { %899 = vadd.xlane.f32.xlu1 %v898_v28 }
 0x46a   :  { %v3494_v11 = vpop.f32.mrb[2].mxu1 }
 0x46b   :  { %v885_v20 = vadd.f32 %v3494_v11, %v3276_v9  ;;  %v879_v24 = vpop.f32.mrb[3].mxu1 }
 0x46c   :  { %v880_v53 = vadd.f32 %v3276_v9, %v879_v24 }
 0x46d   :  { %v891_v46 = vmax.f32 %v885_v20, 0.0 }
 0x46e   :  { %v890_v25 = vmax.f32 %v880_v53, 0.0 }
 0x46f   :  { %v4716_v34 = vadd.f32 %v891_v46, %v4464_v3  ;;  %v966_v3 = vld [vmem:[%s5186_s3] sm:$0xff] }
 0x470   :  { %v4720_v8 = vadd.f32 %v890_v25, %v4467_v7  ;;  %v967_v7 = vld [vmem:[%s5186_s3 + $0x10] sm:$0xff] }
 0x471   :  { %v907_v21 = vsel %vm136_vm0, %v4716_v34, 0.0  ;;  %v3679_v38 = vpack.c.bf16 %v967_v7, %v966_v3 }
 0x472   :  { %v904_v36 = vsel %vm136_vm0, %v4720_v8, 0.0 }
 0x473   :  { %3680 = vmatprep.subr.bf16.mxu0 %v3679_v38 }
 0x474   :  { %3682 = vmatpush3.bf16.msra.mxu0 %v3679_v38  ;;  %v4024_v38 = vld [vmem:[%s5186_s3] sm:$0xff] }
 0x475   :  { %3684 = vmatprep.subr.bf16.mxu0 %v3683_v0 }
 0x478   :  { %3686 = vmatpush3.bf16.msra.mxu0 %v3683_v0 }
 0x4f3   :  { %v903_v50 = vpop.xlane.xlu0 %902 }
 0x4f4   :  { %v911_v35 = vmul.f32 0.03125, %v903_v50  ;;  %v900_v27 = vpop.xlane.xlu1 %899 }
 0x4f5   :  { %v910_v47 = vmul.f32 0.03125, %v900_v27 }
 0x4f6   :  { %v915_v51 = vsub.f32 %v4704_v19, %v911_v35 }
 0x4f7   :  { %v914_v41 = vsub.f32 %v4707_v61, %v910_v47  ;;  %v4760_v47 = vld [vmem:[%s5187_s4 + $0x18] ss:$0 sm:$0xff] }
 0x4f8   :  { %v919_v13 = vmul.f32 %v915_v51, %v915_v51 }
 0x4f9   :  { %v918_v60 = vmul.f32 %v914_v41, %v914_v41 }
 0x4fa   :  { %v925_v5 = vsel %vm136_vm0, %v919_v13, 0.0 }
 0x4fb   :  { %926 = vadd.xlane.f32.xlu1 %v925_v5  ;;  %v922_v18 = vsel %vm136_vm0, %v918_v60, 0.0 }
 0x4fc   :  { %923 = vadd.xlane.f32.xlu0 %v922_v18 }
 0x4ff   :  { %908 = vadd.xlane.f32.xlu1 %v907_v21 }
 0x500   :  { %905 = vadd.xlane.f32.xlu0 %v904_v36 }
 0x516   :  { %1082 = vrot.lane.b32.xlu0 %v3288_v58, %s4053_s13 }
 0x588   :  { %v927_v1 = vpop.xlane.xlu1 %926 }
 0x589   :  { %v935_v22 = vmul.f32 0.03125, %v927_v1  ;;  %v924_v56 = vpop.xlane.xlu0 %923 }
 0x58a   :  { %v934_v49 = vmul.f32 0.03125, %v924_v56 }
 0x58b   :  { %v939_v26 = vadd.f32 1e-05, %v935_v22 }
 0x58c   :  { %v938_v62 = vadd.f32 1e-05, %v934_v49  ;;  %v909_v4 = vpop.xlane.xlu1 %908 }
 0x58d   :  { %3944 = vrsqrt.f32 %v939_v26  ;;  %v913_v16 = vmul.f32 0.03125, %v909_v4  ;;  %v906_v42 = vpop.xlane.xlu0 %905 }
 0x58e   :  { %3946 = vrsqrt.f32 %v938_v62  ;;  %v912_v6 = vmul.f32 0.03125, %v906_v42 }
 0x58f   :  { %v917_v40 = vsub.f32 %v4716_v34, %v913_v16 }
 0x590   :  { %v916_v23 = vsub.f32 %v4720_v8, %v912_v6 }
 0x591   :  { %v921_v2 = vmul.f32 %v917_v40, %v917_v40  ;;  %v1083_v27 = vpop.permute.xlu0 %1082 }
 0x592   :  { %v920_v17 = vmul.f32 %v916_v23, %v916_v23 }
 0x593   :  { %v931_v57 = vsel %vm136_vm0, %v921_v2, 0.0 }
 0x594   :  { %932 = vadd.xlane.f32.xlu1 %v931_v57  ;;  %v928_v52 = vsel %vm136_vm0, %v920_v17, 0.0  ;;  %v1102_v57 = vld [vmem:[%s5184_s1] sm:$0x1] }
 0x595   :  { %v1103_v17 = vsub.f32 1.0, %v1102_v57 }
 0x597   :  { %v3945_v31 = vpop.eup %3944 }
 0x598   :  { %v3947_v59 = vpop.eup %3946  ;;  %v947_v29 = vmul.f32 %v3945_v31, %v915_v51  ;;  %929 = vadd.xlane.f32.xlu1 %v928_v52  ;;  %v1104_v31 = vmul.f32 -1e+30, %v1103_v17  ;;  %v1107_v52 = vsub.s32 0, %v4185_v55 }
 0x599   :  { %v946_v54 = vmul.f32 %v3947_v59, %v914_v41 }
 0x59a   :  { %v955_v48 = vmul.f32 %v3281_v43, %v947_v29 }
 0x59b   :  { %v954_v15 = vmul.f32 %v3281_v43, %v946_v54 }
 0x59c   :  { %v963_v9 = vadd.f32 %v3282_v10, %v955_v48 }
 0x59d   :  { %v962_v37 = vadd.f32 %v3282_v10, %v954_v15 }
 0x59f   :  { %3503 = vmatprep.mubr.msk.f32.mxu0 %vm136_vm0, %v962_v37 }
 0x5a0   :  { %3504 = vmatmul.mubr.msk.f32.vlgmr.msra.gmra.mrb[4].mxu0 %vm136_vm0, %v963_v9 }
 0x621   :  { %v933_v32 = vpop.xlane.xlu1 %932 }
 0x622   :  { %v937_v14 = vmul.f32 0.03125, %v933_v32 }
 0x624   :  { %v941_v44 = vadd.f32 1e-05, %v937_v14 }
 0x625   :  { %v930_v45 = vpop.xlane.xlu1 %929 }
 0x626   :  { %3948 = vrsqrt.f32 %v941_v44  ;;  %v936_v39 = vmul.f32 0.03125, %v930_v45 }
 0x628   :  { %v940_v12 = vadd.f32 1e-05, %v936_v39 }
 0x62a   :  { %3950 = vrsqrt.f32 %v940_v12 }
 0x630   :  { %v3949_v33 = vpop.eup %3948 }
 0x631   :  { %v949_v28 = vmul.f32 %v3949_v33, %v917_v40 }
 0x633   :  { %v957_v24 = vmul.f32 %v3281_v43, %v949_v28 }
 0x634   :  { %v3951_v11 = vpop.eup %3950 }
 0x635   :  { %v948_v20 = vmul.f32 %v3951_v11, %v916_v23  ;;  %v965_v35 = vadd.f32 %v3282_v10, %v957_v24  ;;  %v3289_v24 = vld [vmem:[%s5187_s4 + $0x1a] ss:$0 sm:$0xff] }
 0x637   :  { %v956_v53 = vmul.f32 %v3281_v43, %v948_v20  ;;  %v4834_v43 = vrot.slane %v1104_v31, %v1107_v52 }
 0x639   :  { %v964_v50 = vadd.f32 %v3282_v10, %v956_v53 }
 0x63b   :  { %3506 = vmatprep.mubr.msk.f32.mxu0 %vm136_vm0, %v964_v50 }
 0x63c   :  { %3507 = vmatmul.mubr.msk.f32.gmra.mrb[6].mxu0 %vm136_vm0, %v965_v35 }
 0x673   :  { %v4762_v46 = vpop.f32.mrb[4].mxu0 }
 0x674   :  { %v1086_v51 = vadd.f32 %v4762_v46, %v1083_v27  ;;  %v4765_v25 = vpop.f32.mrb[5].mxu0  ;;  %v4786_v5 = vadd.f32 %v4762_v46, %v4760_v47 }
 0x675   :  { %v4769_v41 = vadd.f32 %v4760_v47, %v4765_v25  ;;  %v1085_v13 = vadd.f32 %v1083_v27, %v4765_v25 }
 0x677   :  { %3513 = vmatprep.mubr.msk.f32.mxu1 %vm1115_vm1, %v4769_v41  ;;  %v4774_v60 = vpack.i.bf16 %v1086_v51, %v1085_v13 }
 0x679   :  { %3824 = vrot.lane.b32.xlu0 %v4774_v60, %s4054_s20  ;;  %3819 = vrot.lane.b32.xlu1 %v4774_v60, %s4052_s2 }
 0x67d   :  { %3829 = vrot.lane.b32.xlu0 %v4774_v60, %s4055_s21  ;;  %1315 = vrot.lane.b32.xlu1 %v4769_v41, %s4056_s22 }
 0x681   :  { %1526 = vrot.lane.b32.xlu0 %v4769_v41, %s4057_s23  ;;  %1317 = vrot.lane.b32.xlu1 %v4786_v5, %s4056_s22 }
 0x685   :  { %1528 = vrot.lane.b32.xlu1 %v4786_v5, %s4057_s23 }
 0x6eb   :  { %v3825_v18 = vpop.permute.xlu0 %3824  ;;  %v3820_v21 = vpop.permute.xlu1 %3819 }
 0x6ec   :  { %v3827_v36 = vunpack.i.h.bf16 %v3825_v18  ;;  %v3826_v3 = vunpack.i.l.bf16 %v3825_v18  ;;  %v3822_v7 = vunpack.i.h.bf16 %v3820_v21  ;;  %v3821_v63 = vunpack.i.l.bf16 %v3820_v21 }
 0x6ee   :  { %v3697_v30 = vpack.c.bf16 %v3827_v36, %v3826_v3  ;;  %v3687_v0 = vpack.c.bf16 %v3822_v7, %v3821_v63 }
 0x6ef   :  { %v3830_v58 = vpop.permute.xlu0 %3829  ;;  %v1316_v1 = vpop.permute.xlu1 %1315 }
 0x6f0   :  { %v3832_v22 = vunpack.i.h.bf16 %v3830_v58  ;;  %v3831_v56 = vunpack.i.l.bf16 %v3830_v58  ;;  %3689 = vmatprep.subr.msk.bf16.mxu1 %vm4796_vm2, %v3687_v0  ;;  %3699 = vmatprep.subr.msk.bf16.mxu0 %vm4796_vm2, %v3697_v30 }
 0x6f1   :  { %3527 = vmatprep.mubr.msk.f32.mxu0 %vm1115_vm1, %v1316_v1  ;;  %3692 = vmatpush3.bf16.xpose.msk.msra.mxu1 %vm4796_vm2, %v3687_v0 }
 0x6f2   :  { %v3707_v49 = vpack.c.bf16 %v3832_v22, %v3831_v56  ;;  %3702 = vmatpush3.bf16.xpose.msk.msra.mxu0 %vm4796_vm2, %v3697_v30 }
 0x6f3   :  { %v1318_v26 = vpop.permute.xlu1 %1317  ;;  %v1527_v62 = vpop.permute.xlu0 %1526 }
 0x6f4   :  { %3709 = vmatprep.subr.msk.bf16.mxu0 %vm4796_vm2, %v3707_v49 }
 0x6f7   :  { %v1529_v4 = vpop.permute.xlu1 %1528 }
 0x6f8   :  { %3514 = vmatmul.mubr.msk.f32.vlgmr.msra.gmra.mrb[4].mxu1 %vm1115_vm1, %v4786_v5 }
 0x6f9   :  { %3528 = vmatmul.mubr.msk.f32.vlgmr.msra.gmra.mrb[8].mxu0 %vm1115_vm1, %v1318_v26 }
 0x6fa   :  { %3712 = vmatpush3.bf16.xpose.msk.msra.mxu0 %vm4796_vm2, %v3707_v49  ;;  %3541 = vmatprep.mubr.msk.f32.mxu0 %vm1115_vm1, %v1527_v62 }
 0x701   :  { %3542 = vmatmul.mubr.msk.f32.vlgmr.msra.gmra.mrb[10].mxu0 %vm1115_vm1, %v1529_v4 }
 0x70f   :  { %v4818_v16 = vpop.f32.mrb[6].mxu0 }
 0x710   :  { %v1088_v42 = vadd.f32 %v4818_v16, %v1083_v27  ;;  %v1058_v6 = vpop.f32.mrb[7].mxu0 }
 0x711   :  { %v4822_v40 = vadd.f32 %v4760_v47, %v1058_v6  ;;  %v1087_v23 = vadd.f32 %v1083_v27, %v1058_v6 }
 0x713   :  { %3569 = vmatprep.mubr.msk.f32.mxu0 %vm1115_vm1, %v4822_v40  ;;  %v4826_v2 = vpack.i.bf16 %v1088_v42, %v1087_v23 }
 0x7cb   :  { %v3515_v59 = vpop.f32.mrb[4].mxu1 }
 0x7cc   :  { %v1198_v29 = vadd.f32 %v3515_v59, %v4834_v43  ;;  %v3529_v54 = vpop.f32.mrb[8].mxu0  ;;  %v1192_v10 = vpop.f32.mrb[5].mxu1 }
 0x7cd   :  { %v1193_v48 = vadd.f32 %v1192_v10, %v4834_v43  ;;  %v1397_v15 = vpop.f32.mrb[9].mxu0  ;;  %v1403_v14 = vadd.f32 %v3529_v54, %v4834_v43 }
 0x7ce   :  { %v1205_v37 = vsel %vm1201_vm5, %v1198_v29, -inf  ;;  %v1398_v9 = vadd.f32 %v1397_v15, %v4834_v43 }
 0x7cf   :  { %1206 = vmax.xlane.f32.xlu1 %v1205_v37  ;;  %v1202_v32 = vsel %vm1201_vm5, %v1193_v48, -inf  ;;  %v1409_v11 = vsel %vm1201_vm5, %v1403_v14, -inf }
 0x7d0   :  { %1203 = vmax.xlane.f32.xlu0 %v1202_v32  ;;  %v1406_v44 = vsel %vm1201_vm5, %v1398_v9, -inf }
 0x7d4   :  { %v3543_v45 = vpop.f32.mrb[10].mxu0  ;;  %1407 = vmax.xlane.f32.xlu0 %v1406_v44 }
 0x7d5   :  { %v1614_v39 = vadd.f32 %v3543_v45, %v4834_v43  ;;  %v1608_v12 = vpop.f32.mrb[11].mxu0 }
 0x7d6   :  { %v1609_v33 = vadd.f32 %v1608_v12, %v4834_v43 }
 0x7d7   :  { %v1620_v28 = vsel %vm1201_vm5, %v1614_v39, -inf }
 0x7d8   :  { %1621 = vmax.xlane.f32.xlu1 %v1620_v28  ;;  %1410 = vmax.xlane.f32.xlu0 %v1409_v11  ;;  %v1617_v20 = vsel %vm1201_vm5, %v1609_v33, -inf }
 0x7dc   :  { %1618 = vmax.xlane.f32.xlu0 %v1617_v20 }
 0x7f2   :  { %1095 = vrot.lane.b32.xlu0 %v3289_v24, %s4058_s28 }
 0x85d   :  { %v1204_v53 = vpop.xlane.xlu0 %1203 }
 0x85e   :  { %v1208_v0 = vsub.f32 %v1193_v48, %v1204_v53 }
 0x860   :  { %v1210_v1 = vmul.f32 1.442695, %v1208_v0 }
 0x861   :  { %v1408_v50 = vpop.xlane.xlu0 %1407 }
 0x862   :  { %v1412_v22 = vsub.f32 %v1398_v9, %v1408_v50 }
 0x865   :  { %v1411_v35 = vpop.xlane.xlu0 %1410 }
 0x866   :  { %v1413_v30 = vsub.f32 %v1403_v14, %v1411_v35 }
 0x868   :  { %v1416_v58 = vmul.f32 1.442695, %v1413_v30 }
 0x869   :  { %v1619_v27 = vpop.xlane.xlu0 %1618 }
 0x86a   :  { %v1623_v62 = vsub.f32 %v1609_v33, %v1619_v27 }
 0x86d   :  { %v1096_v51 = vpop.permute.xlu0 %1095 }
 0x86e   :  { %v1098_v13 = vadd.f32 %v1096_v51, %v4765_v25  ;;  %v1099_v18 = vadd.f32 %v4762_v46, %v1096_v51  ;;  %v1100_v21 = vadd.f32 %v1096_v51, %v1058_v6  ;;  %v1101_v36 = vadd.f32 %v4818_v16, %v1096_v51  ;;  %v1207_v46 = vpop.xlane.xlu1 %1206 }
 0x86f   :  { %v1209_v25 = vsub.f32 %v1198_v29, %v1207_v46  ;;  %v1625_v6 = vmul.f32 1.442695, %v1623_v62 }
 0x870   :  { %v4855_v3 = vpack.i.bf16 %v1099_v18, %v1098_v13  ;;  %v4857_v7 = vpack.i.bf16 %v1101_v36, %v1100_v21 }
 0x871   :  { %v1212_v63 = vmul.f32 1.442695, %v1209_v25 }
 0x872   :  { %3839 = vrot.lane.b32.xlu1 %v4855_v3, %s4059_s29  ;;  %3834 = vrot.lane.b32.xlu0 %v4855_v3, %s4058_s28  ;;  %v1622_v56 = vpop.xlane.xlu1 %1621 }
 0x873   :  { %3952 = vpow2.f32 %v1212_v63  ;;  %v1624_v49 = vsub.f32 %v1614_v39, %v1622_v56 }
 0x874   :  { %3954 = vpow2.f32 %v1416_v58 }
 0x875   :  { %3956 = vpow2.f32 %v1210_v1 }
 0x876   :  { %3844 = vrot.lane.b32.xlu0 %v4855_v3, %s4060_s30 }
 0x87a   :  { %3849 = vrot.lane.b32.xlu0 %v4774_v60, %s4061_s6  ;;  %v1414_v60 = vmul.f32 1.442695, %v1412_v22 }
 0x87c   :  { %3958 = vpow2.f32 %v1414_v60 }
 0x87d   :  { %v4871_v26 = vpop.eup %3952 }
 0x87e   :  { %1737 = vrot.lane.b32.xlu0 %v4769_v41, %s4062_s7  ;;  %v1627_v41 = vmul.f32 1.442695, %v1624_v49  ;;  %v1217_v4 = vsel %vm1201_vm5, %v4871_v26, 0.0  ;;  %v4875_v42 = vpop.eup %3954 }
 0x87f   :  { %v1421_v23 = vsel %vm1201_vm5, %v4875_v42, 0.0  ;;  %v3957_v57 = vpop.eup %3956 }
 0x880   :  { %3960 = vpow2.f32 %v1627_v41  ;;  %v1214_v17 = vsel %vm1201_vm5, %v3957_v57, 0.0 }
 0x881   :  { %3962 = vpow2.f32 %v1625_v6 }
 0x882   :  { %3854 = vrot.lane.b32.xlu0 %v4826_v2, %s4052_s2 }
 0x886   :  { %v3959_v31 = vpop.eup %3958 }
 0x887   :  { %v1418_v59 = vsel %vm1201_vm5, %v3959_v31, 0.0 }
 0x88a   :  { %v4881_v29 = vpop.eup %3960 }
 0x88b   :  { %v1632_v54 = vsel %vm1201_vm5, %v4881_v29, 0.0  ;;  %v4885_v10 = vpop.eup %3962 }
 0x88c   :  { %v1629_v48 = vsel %vm1201_vm5, %v4885_v10, 0.0 }
 0x896   :  { %1218 = vadd.xlane.f32.xlu1 %v1217_v4 }
 0x89a   :  { %1422 = vadd.xlane.f32.xlu1 %v1421_v23 }
 0x89e   :  { %1215 = vadd.xlane.f32.xlu1 %v1214_v17 }
 0x8a2   :  { %1419 = vadd.xlane.f32.xlu1 %v1418_v59  ;;  %v1948_v59 = vld [vmem:[%s5184_s1 + $0x1] sm:$0x1]  ;;  %s4063_s1 = smov 40  }
 0x8a6   :  { %1633 = vadd.xlane.f32.xlu1 %v1632_v54  ;;  %v1949_v54 = vsub.f32 1.0, %v1948_v59 }
 0x8aa   :  { %1630 = vadd.xlane.f32.xlu1 %v1629_v48  ;;  %v1950_v48 = vmul.f32 -1e+30, %v1949_v54 }
 0x8bb   :  { %1739 = vrot.lane.b32.xlu1 %v4786_v5, %s4062_s7  ;;  %v4897_v5 = vadd.f32 %v4818_v16, %v4760_v47 }
 0x8e4   :  { %v3840_v15 = vpop.permute.xlu1 %3839  ;;  %v3835_v37 = vpop.permute.xlu0 %3834 }
 0x8e5   :  { %v3842_v9 = vunpack.i.h.bf16 %v3840_v15  ;;  %v3841_v32 = vunpack.i.l.bf16 %v3840_v15  ;;  %v3837_v14 = vunpack.i.h.bf16 %v3835_v37  ;;  %v3836_v44 = vunpack.i.l.bf16 %v3835_v37 }
 0x8e6   :  { %v4932_v15 = vrot.slane %v1950_v48, %v1107_v52 }
 0x8e7   :  { %v3693_v45 = vpack.c.bf16 %v3837_v14, %v3836_v44  ;;  %v3703_v12 = vpack.c.bf16 %v3842_v9, %v3841_v32 }
 0x8e8   :  { %v3845_v39 = vpop.permute.xlu0 %3844 }
 0x8e9   :  { %3694 = vmatprep.subr.bf16.mxu1 %v3693_v45  ;;  %v3847_v36 = vunpack.i.h.bf16 %v3845_v39  ;;  %v3846_v46 = vunpack.i.l.bf16 %v3845_v39 }
 0x8ea   :  { %3696 = vmatpush3.bf16.msra.mxu1 %v3693_v45 }
 0x8eb   :  { %3704 = vmatprep.subr.bf16.mxu1 %v3703_v12  ;;  %v3713_v0 = vpack.c.bf16 %v3847_v36, %v3846_v46 }
 0x8ec   :  { %v3850_v33 = vpop.permute.xlu0 %3849 }
 0x8ed   :  { %v3852_v58 = vunpack.i.h.bf16 %v3850_v33  ;;  %v3851_v1 = vunpack.i.l.bf16 %v3850_v33 }
 0x8ef   :  { %v3717_v60 = vpack.c.bf16 %v3852_v58, %v3851_v1 }
 0x8f0   :  { %v1738_v28 = vpop.permute.xlu0 %1737 }
 0x8f4   :  { %v3855_v11 = vpop.permute.xlu0 %3854 }
 0x8f5   :  { %v3857_v20 = vunpack.i.h.bf16 %v3855_v11  ;;  %v3856_v24 = vunpack.i.l.bf16 %v3855_v11 }
 0x8f7   :  { %v3727_v53 = vpack.c.bf16 %v3857_v20, %v3856_v24 }
 0x8f9   :  { %3729 = vmatprep.subr.msk.bf16.mxu0 %vm4796_vm2, %v3727_v53 }
 0x8fa   :  { %3732 = vmatpush3.bf16.xpose.msk.msra.mxu0 %vm4796_vm2, %v3727_v53 }
 0x901   :  { %3570 = vmatmul.mubr.msk.f32.vlgmr.msra.gmra.mrb[12].mxu0 %vm1115_vm1, %v4897_v5 }
 0x923   :  { %v1219_v50 = vpop.xlane.xlu1 %1218 }
 0x924   :  { %3964 = vrcp.f32 %v1219_v50 }
 0x927   :  { %v1423_v35 = vpop.xlane.xlu1 %1422 }
 0x92b   :  { %v1216_v27 = vpop.xlane.xlu1 %1215 }
 0x92c   :  { %3966 = vrcp.f32 %v1216_v27 }
 0x92d   :  { %3968 = vrcp.f32 %v1423_v35 }
 0x92e   :  { %v3965_v18 = vpop.eup %3964 }
 0x92f   :  { %v1420_v51 = vpop.xlane.xlu1 %1419  ;;  %v1223_v16 = vmul.f32 %v3965_v18, %v4871_v26 }
 0x930   :  { %3970 = vrcp.f32 %v1420_v51 }
 0x933   :  { %v1634_v13 = vpop.xlane.xlu1 %1633 }
 0x934   :  { %3972 = vrcp.f32 %v1634_v13 }
 0x936   :  { %v3967_v21 = vpop.eup %3966 }
 0x937   :  { %v1631_v25 = vpop.xlane.xlu1 %1630  ;;  %v1222_v47 = vmul.f32 %v3967_v21, %v3957_v57  ;;  %v3969_v63 = vpop.eup %3968 }
 0x938   :  { %3974 = vrcp.f32 %v1631_v25  ;;  %v1427_v56 = vmul.f32 %v3969_v63, %v4875_v42 }
 0x939   :  { %3520 = vmatprep.mubr.msk.f32.mxu1 %vm1201_vm5, %v1222_v47 }
 0x93a   :  { %v3971_v30 = vpop.eup %3970  ;;  %3521 = vmatmul.mubr.msk.f32.vlgmr.msra.gmra.mrb[6].mxu1 %vm1201_vm5, %v1223_v16 }
 0x93b   :  { %3706 = vmatpush3.bf16.msra.mxu1 %v3703_v12  ;;  %v1426_v22 = vmul.f32 %v3971_v30, %v3959_v31  ;;  %v1740_v4 = vpop.permute.xlu1 %1739 }
 0x93c   :  { %3714 = vmatprep.subr.bf16.mxu1 %v3713_v0 }
 0x93d   :  { %3534 = vmatprep.mubr.msk.f32.mxu1 %vm1201_vm5, %v1426_v22 }
 0x93e   :  { %3535 = vmatmul.mubr.msk.f32.vlgmr.msra.gmra.mrb[8].mxu1 %vm1201_vm5, %v1427_v56  ;;  %v3973_v49 = vpop.eup %3972 }
 0x93f   :  { %3716 = vmatpush3.bf16.msra.mxu1 %v3713_v0  ;;  %v1638_v62 = vmul.f32 %v3973_v49, %v4881_v29 }
 0x940   :  { %3719 = vmatprep.subr.msk.bf16.mxu1 %vm4796_vm2, %v3717_v60 }
 0x942   :  { %v3975_v26 = vpop.eup %3974 }
 0x943   :  { %v1637_v41 = vmul.f32 %v3975_v26, %v4885_v10 }
 0x945   :  { %3548 = vmatprep.mubr.msk.f32.mxu1 %vm1201_vm5, %v1637_v41 }
 0x946   :  { %3549 = vmatmul.mubr.msk.f32.vlgmr.msra.gmra.mrb[10].mxu1 %vm1201_vm5, %v1638_v62 }
 0x947   :  { %3555 = vmatprep.mubr.msk.f32.mxu1 %vm1115_vm1, %v1738_v28 }
 0x948   :  { %3722 = vmatpush3.bf16.xpose.msk.msra.mxu1 %vm4796_vm2, %v3717_v60 }
 0x94f   :  { %3556 = vmatmul.mubr.msk.f32.vlgmr.msra.gmra.mrb[12].mxu1 %vm1115_vm1, %v1740_v4 }
 0x9d4   :  { %v3571_v42 = vpop.f32.mrb[12].mxu0 }
 0x9d5   :  { %v2037_v6 = vpop.f32.mrb[13].mxu0  ;;  %v2043_v12 = vadd.f32 %v3571_v42, %v4932_v15 }
 0x9d6   :  { %v2038_v45 = vadd.f32 %v2037_v6, %v4932_v15 }
 0x9d7   :  { %v2049_v52 = vsel %vm1201_vm5, %v2043_v12, -inf }
 0x9d8   :  { %v2046_v55 = vsel %vm1201_vm5, %v2038_v45, -inf }
 0xa0d   :  { %v3522_v23 = vpop.f32.mrb[6].mxu1 }
 0xa0e   :  { %1314 = vst.msk [vmem:[#allocation2 + $0x8] sm:$0xff] %vm1115_vm1, %v3522_v23  ;;  %v1304_v57 = vpop.f32.mrb[7].mxu1 }
 0xa0f   :  { %1313 = vst.msk [vmem:[#allocation2] sm:$0xff] %vm1115_vm1, %v1304_v57 }
 0xa11   :  { %v4919_v17 = vpop.f32.mrb[8].mxu1 }
 0xa12   :  { %v4921_v31 = vpop.f32.mrb[9].mxu1 }
 0xa19   :  { %v4926_v29 = vpop.f32.mrb[10].mxu1 }
 0xa1a   :  { %v4928_v10 = vpop.f32.mrb[11].mxu1 }
 0xa22   :  { %v3557_v37 = vpop.f32.mrb[12].mxu1 }
 0xa23   :  { %v1825_v9 = vadd.f32 %v3557_v37, %v4834_v43  ;;  %v1819_v32 = vpop.f32.mrb[13].mxu1 }
 0xa24   :  { %v1820_v14 = vadd.f32 %v1819_v32, %v4834_v43 }
 0xa25   :  { %v1831_v44 = vsel %vm1201_vm5, %v1825_v9, -inf }
 0xa26   :  { %1832 = vmax.xlane.f32.xlu1 %v1831_v44  ;;  %v1828_v39 = vsel %vm1201_vm5, %v1820_v14, -inf }
 0xa27   :  { %1829 = vmax.xlane.f32.xlu0 %v1828_v39 }
 0xa2b   :  { %2047 = vmax.xlane.f32.xlu0 %v2046_v55 }
 0xa2f   :  { %2050 = vmax.xlane.f32.xlu0 %v2049_v52 }
 0xab3   :  { %v1833_v11 = vpop.xlane.xlu1 %1832 }
 0xab4   :  { %v1830_v33 = vpop.xlane.xlu0 %1829  ;;  %v1835_v24 = vsub.f32 %v1825_v9, %v1833_v11 }
 0xab5   :  { %v1834_v28 = vsub.f32 %v1820_v14, %v1830_v33 }
 0xab6   :  { %v1838_v51 = vmul.f32 1.442695, %v1835_v24 }
 0xab7   :  { %v1836_v53 = vmul.f32 1.442695, %v1834_v28 }
 0xab8   :  { %v2048_v43 = vpop.xlane.xlu0 %2047 }
 0xab9   :  { %v2052_v20 = vsub.f32 %v2038_v45, %v2048_v43 }
 0xabb   :  { %v2054_v50 = vmul.f32 1.442695, %v2052_v20 }
 0xabc   :  { %v2051_v35 = vpop.xlane.xlu0 %2050 }
 0xabd   :  { %3976 = vpow2.f32 %v2054_v50  ;;  %v2053_v27 = vsub.f32 %v2043_v12, %v2051_v35 }
 0xabe   :  { %3978 = vpow2.f32 %v1836_v53 }
 0xabf   :  { %v2056_v13 = vmul.f32 1.442695, %v2053_v27 }
 0xac1   :  { %3980 = vpow2.f32 %v2056_v13 }
 0xac2   :  { %3982 = vpow2.f32 %v1838_v51 }
 0xac7   :  { %v3977_v18 = vpop.eup %3976 }
 0xac8   :  { %v2058_v21 = vsel %vm1201_vm5, %v3977_v18, 0.0  ;;  %v3979_v36 = vpop.eup %3978 }
 0xac9   :  { %2059 = vadd.xlane.f32.xlu0 %v2058_v21  ;;  %v1840_v25 = vsel %vm1201_vm5, %v3979_v36, 0.0 }
 0xacb   :  { %v3981_v46 = vpop.eup %3980 }
 0xacc   :  { %v2061_v47 = vsel %vm1201_vm5, %v3981_v46, 0.0  ;;  %v3983_v16 = vpop.eup %3982 }
 0xacd   :  { %1841 = vadd.xlane.f32.xlu0 %v1840_v25  ;;  %2062 = vadd.xlane.f32.xlu1 %v2061_v47  ;;  %v1843_v63 = vsel %vm1201_vm5, %v3983_v16, 0.0 }
 0xad1   :  { %1844 = vadd.xlane.f32.xlu1 %v1843_v63 }
 0xae2   :  { %3864 = vrot.lane.b32.xlu1 %v4857_v7, %s4058_s28 }
 0xae3   :  { %3859 = vrot.lane.b32.xlu0 %v4855_v3, %s4063_s1 }
 0xae6   :  { %3869 = vrot.lane.b32.xlu1 %v4826_v2, %s4054_s20 }
 0xae7   :  { %2161 = vrot.lane.b32.xlu0 %v4897_v5, %s4056_s22 }
 0xaea   :  { %2159 = vrot.lane.b32.xlu1 %v4822_v40, %s4056_s22 }
 0xb56   :  { %v2060_v30 = vpop.xlane.xlu0 %2059 }
 0xb5a   :  { %v2063_v0 = vpop.xlane.xlu1 %2062  ;;  %v1842_v58 = vpop.xlane.xlu0 %1841 }
 0xb5b   :  { %3984 = vrcp.f32 %v1842_v58 }
 0xb5c   :  { %3986 = vrcp.f32 %v2060_v30 }
 0xb5e   :  { %v1845_v1 = vpop.xlane.xlu1 %1844  ;;  %v3860_v22 = vpop.permute.xlu0 %3859 }
 0xb5f   :  { %3988 = vrcp.f32 %v1845_v1  ;;  %v3862_v56 = vunpack.i.h.bf16 %v3860_v22  ;;  %v3861_v60 = vunpack.i.l.bf16 %v3860_v22 }
 0xb60   :  { %3990 = vrcp.f32 %v2063_v0 }
 0xb61   :  { %v3723_v3 = vpack.c.bf16 %v3862_v56, %v3861_v60 }
 0xb62   :  { %v3865_v49 = vpop.permute.xlu1 %3864  ;;  %v2162_v45 = vpop.permute.xlu0 %2161 }
 0xb63   :  { %v3867_v26 = vunpack.i.h.bf16 %v3865_v49  ;;  %v3866_v41 = vunpack.i.l.bf16 %v3865_v49  ;;  %3724 = vmatprep.subr.bf16.mxu1 %v3723_v3 }
 0xb64   :  { %3726 = vmatpush3.bf16.msra.mxu1 %v3723_v3 }
 0xb65   :  { %v3733_v62 = vpack.c.bf16 %v3867_v26, %v3866_v41  ;;  %v3985_v4 = vpop.eup %3984 }
 0xb66   :  { %v3870_v42 = vpop.permute.xlu1 %3869  ;;  %v1848_v6 = vmul.f32 %v3985_v4, %v3979_v36  ;;  %v3987_v23 = vpop.eup %3986 }
 0xb67   :  { %3734 = vmatprep.subr.bf16.mxu1 %v3733_v62  ;;  %v3872_v57 = vunpack.i.h.bf16 %v3870_v42  ;;  %v3871_v59 = vunpack.i.l.bf16 %v3870_v42  ;;  %v2066_v9 = vmul.f32 %v3987_v23, %v3977_v18 }
 0xb68   :  { %3562 = vmatprep.mubr.msk.f32.mxu1 %vm1201_vm5, %v1848_v6 }
 0xb69   :  { %v3989_v54 = vpop.eup %3988  ;;  %v3737_v32 = vpack.c.bf16 %v3872_v57, %v3871_v59 }
 0xb6a   :  { %v1849_v48 = vmul.f32 %v3989_v54, %v3983_v16  ;;  %v3991_v37 = vpop.eup %3990  ;;  %v2160_v44 = vpop.permute.xlu1 %2159 }
 0xb6b   :  { %v2067_v14 = vmul.f32 %v3991_v37, %v3981_v46 }
 0xb6c   :  { %3563 = vmatmul.mubr.msk.f32.vlgmr.msra.gmra.mrb[14].mxu1 %vm1201_vm5, %v1849_v48 }
 0xb6d   :  { %3736 = vmatpush3.bf16.msra.mxu1 %v3733_v62  ;;  %3576 = vmatprep.mubr.msk.f32.mxu1 %vm1201_vm5, %v2066_v9 }
 0xb6e   :  { %3739 = vmatprep.subr.msk.bf16.mxu1 %vm4796_vm2, %v3737_v32 }
 0xb70   :  { %3577 = vmatmul.mubr.msk.f32.vlgmr.msra.gmra.mrb[16].mxu1 %vm1201_vm5, %v2067_v14 }
 0xb71   :  { %3583 = vmatprep.mubr.msk.f32.mxu1 %vm1115_vm1, %v2160_v44 }
 0xb76   :  { %3742 = vmatpush3.bf16.xpose.msk.msra.mxu1 %vm4796_vm2, %v3737_v32 }
 0xb7d   :  { %3584 = vmatmul.mubr.msk.f32.vlgmr.msra.gmra.mrb[18].mxu1 %vm1115_vm1, %v2162_v45 }
 0xc3f   :  { %v4966_v39 = vpop.f32.mrb[14].mxu1 }
 0xc40   :  { %v4968_v12 = vpop.f32.mrb[15].mxu1 }
 0xc43   :  { %v3578_v55 = vpop.f32.mrb[16].mxu1 }
 0xc44   :  { %2158 = vst.msk [vmem:[#allocation2 + $0x18] sm:$0xff] %vm1115_vm1, %v3578_v55  ;;  %v2148_v52 = vpop.f32.mrb[17].mxu1 }
 0xc45   :  { %2157 = vst.msk [vmem:[#allocation2 + $0x10] sm:$0xff] %vm1115_vm1, %v2148_v52 }
 0xc50   :  { %v3585_v33 = vpop.f32.mrb[18].mxu1 }
 0xc51   :  { %v2247_v28 = vadd.f32 %v3585_v33, %v4932_v15  ;;  %v2241_v11 = vpop.f32.mrb[19].mxu1 }
 0xc52   :  { %v2242_v43 = vadd.f32 %v2241_v11, %v4932_v15 }
 0xc53   :  { %v2253_v20 = vsel %vm1201_vm5, %v2247_v28, -inf }
 0xc54   :  { %2254 = vmax.xlane.f32.xlu0 %v2253_v20  ;;  %v2250_v24 = vsel %vm1201_vm5, %v2242_v43, -inf }
 0xc55   :  { %2251 = vmax.xlane.f32.xlu1 %v2250_v24 }
 0xc66   :  { %3874 = vrot.lane.b32.xlu1 %v4857_v7, %s4059_s29 }
 0xc6a   :  { %2369 = vrot.lane.b32.xlu1 %v4822_v40, %s4057_s23 }
 0xc6e   :  { %2371 = vrot.lane.b32.xlu1 %v4897_v5, %s4057_s23 }
 0xce1   :  { %v2255_v53 = vpop.xlane.xlu0 %2254 }
 0xce2   :  { %v2257_v50 = vsub.f32 %v2247_v28, %v2255_v53  ;;  %v2252_v35 = vpop.xlane.xlu1 %2251 }
 0xce3   :  { %v2256_v27 = vsub.f32 %v2242_v43, %v2252_v35 }
 0xce4   :  { %v2260_v51 = vmul.f32 1.442695, %v2257_v50 }
 0xce5   :  { %v2258_v13 = vmul.f32 1.442695, %v2256_v27 }
 0xce6   :  { %3992 = vpow2.f32 %v2260_v51  ;;  %v3875_v18 = vpop.permute.xlu1 %3874 }
 0xce7   :  { %v3877_v21 = vunpack.i.h.bf16 %v3875_v18  ;;  %v3876_v36 = vunpack.i.l.bf16 %v3875_v18  ;;  %3994 = vpow2.f32 %v2258_v13 }
 0xce9   :  { %v3743_v46 = vpack.c.bf16 %v3877_v21, %v3876_v36 }
 0xcea   :  { %v2370_v41 = vpop.permute.xlu1 %2369 }
 0xceb   :  { %3744 = vmatprep.subr.bf16.mxu0 %v3743_v46 }
 0xcec   :  { %3746 = vmatpush3.bf16.msra.mxu0 %v3743_v46 }
 0xcee   :  { %v2372_v62 = vpop.permute.xlu1 %2371 }
 0xcf0   :  { %v3993_v25 = vpop.eup %3992 }
 0xcf1   :  { %v2265_v47 = vsel %vm1201_vm5, %v3993_v25, 0.0  ;;  %v3995_v16 = vpop.eup %3994 }
 0xcf2   :  { %2266 = vadd.xlane.f32.xlu0 %v2265_v47  ;;  %v2262_v63 = vsel %vm1201_vm5, %v3995_v16, 0.0 }
 0xcf6   :  { %2263 = vadd.xlane.f32.xlu0 %v2262_v63 }
 0xd0c   :  { %3879 = vrot.lane.b32.xlu0 %v4826_v2, %s4055_s21 }
 0xd7f   :  { %v2267_v30 = vpop.xlane.xlu0 %2266 }
 0xd80   :  { %3996 = vrcp.f32 %v2267_v30 }
 0xd83   :  { %v2264_v0 = vpop.xlane.xlu0 %2263 }
 0xd84   :  { %3998 = vrcp.f32 %v2264_v0 }
 0xd87   :  { %v3880_v58 = vpop.permute.xlu0 %3879 }
 0xd88   :  { %v3882_v1 = vunpack.i.h.bf16 %v3880_v58  ;;  %v3881_v22 = vunpack.i.l.bf16 %v3880_v58 }
 0xd8a   :  { %v3747_v56 = vpack.c.bf16 %v3882_v1, %v3881_v22  ;;  %v3997_v60 = vpop.eup %3996 }
 0xd8b   :  { %v2271_v26 = vmul.f32 %v3997_v60, %v3993_v25 }
 0xd8c   :  { %3749 = vmatprep.subr.msk.bf16.mxu0 %vm4796_vm2, %v3747_v56 }
 0xd8e   :  { %v3999_v3 = vpop.eup %3998 }
 0xd8f   :  { %v2270_v49 = vmul.f32 %v3999_v3, %v3995_v16 }
 0xd91   :  { %3590 = vmatprep.mubr.msk.f32.mxu0 %vm1201_vm5, %v2270_v49 }
 0xd92   :  { %3591 = vmatmul.mubr.msk.f32.vlgmr.msra.gmra.mrb[14].mxu0 %vm1201_vm5, %v2271_v26 }
 0xd93   :  { %3752 = vmatpush3.bf16.xpose.msk.msra.mxu0 %vm4796_vm2, %v3747_v56  ;;  %3597 = vmatprep.mubr.msk.f32.mxu0 %vm1115_vm1, %v2370_v41 }
 0xd9a   :  { %3598 = vmatmul.mubr.msk.f32.vlgmr.msra.gmra.mrb[16].mxu0 %vm1115_vm1, %v2372_v62 }
 0xe65   :  { %v4994_v4 = vpop.f32.mrb[14].mxu0 }
 0xe66   :  { %v4996_v42 = vpop.f32.mrb[15].mxu0 }
 0xe6d   :  { %v3599_v6 = vpop.f32.mrb[16].mxu0 }
 0xe6e   :  { %v2457_v23 = vadd.f32 %v3599_v6, %v4932_v15  ;;  %v2451_v57 = vpop.f32.mrb[17].mxu0 }
 0xe6f   :  { %v2452_v59 = vadd.f32 %v2451_v57, %v4932_v15 }
 0xe70   :  { %v2463_v54 = vsel %vm1201_vm5, %v2457_v23, -inf }
 0xe71   :  { %2464 = vmax.xlane.f32.xlu0 %v2463_v54  ;;  %v2460_v48 = vsel %vm1201_vm5, %v2452_v59, -inf }
 0xe72   :  { %2461 = vmax.xlane.f32.xlu1 %v2460_v48 }
 0xe83   :  { %3884 = vrot.lane.b32.xlu1 %v4857_v7, %s4060_s30 }
 0xe87   :  { %2579 = vrot.lane.b32.xlu1 %v4822_v40, %s4062_s7 }
 0xe8b   :  { %2581 = vrot.lane.b32.xlu1 %v4897_v5, %s4062_s7 }
 0xefe   :  { %v2465_v37 = vpop.xlane.xlu0 %2464 }
 0xeff   :  { %v2467_v9 = vsub.f32 %v2457_v23, %v2465_v37  ;;  %v2462_v32 = vpop.xlane.xlu1 %2461 }
 0xf00   :  { %v2466_v14 = vsub.f32 %v2452_v59, %v2462_v32 }
 0xf01   :  { %v2470_v44 = vmul.f32 1.442695, %v2467_v9 }
 0xf02   :  { %v2468_v45 = vmul.f32 1.442695, %v2466_v14 }
 0xf03   :  { %4000 = vpow2.f32 %v2470_v44  ;;  %v3885_v55 = vpop.permute.xlu1 %3884  ;;  %v4026_v44 = vld [vmem:[%s5186_s3 + $0x20] sm:$0xff] }
 0xf04   :  { %v3887_v52 = vunpack.i.h.bf16 %v3885_v55  ;;  %v3886_v33 = vunpack.i.l.bf16 %v3885_v55  ;;  %4002 = vpow2.f32 %v2468_v45  ;;  %v4027_v45 = vld [vmem:[%s5186_s3 + $0x30] sm:$0xff] }
 0xf05   :  { %v3903_v55 = vpack.i.bf16 %v4027_v45, %v4026_v44 }
 0xf06   :  { %v3753_v28 = vpack.c.bf16 %v3887_v52, %v3886_v33 }
 0xf07   :  { %v2580_v36 = vpop.permute.xlu1 %2579 }
 0xf08   :  { %3754 = vmatprep.subr.bf16.mxu1 %v3753_v28 }
 0xf09   :  { %3756 = vmatpush3.bf16.msra.mxu1 %v3753_v28 }
 0xf0d   :  { %v4001_v11 = vpop.eup %4000 }
 0xf0e   :  { %v2475_v40 = vsel %vm1201_vm5, %v4001_v11, 0.0  ;;  %v4003_v43 = vpop.eup %4002 }
 0xf0f   :  { %2476 = vadd.xlane.f32.xlu0 %v2475_v40  ;;  %v2472_v5 = vsel %vm1201_vm5, %v4003_v43, 0.0 }
 0xf13   :  { %2473 = vadd.xlane.f32.xlu0 %v2472_v5 }
 0xf29   :  { %3889 = vrot.lane.b32.xlu0 %v4826_v2, %s4061_s6  ;;  %v2582_v2 = vpop.permute.xlu1 %2581 }
 0xf9c   :  { %v2477_v20 = vpop.xlane.xlu0 %2476 }
 0xf9d   :  { %4004 = vrcp.f32 %v2477_v20 }
 0xfa0   :  { %v2474_v24 = vpop.xlane.xlu0 %2473 }
 0xfa1   :  { %4006 = vrcp.f32 %v2474_v24 }
 0xfa4   :  { %v3890_v53 = vpop.permute.xlu0 %3889 }
 0xfa5   :  { %v3892_v50 = vunpack.i.h.bf16 %v3890_v53  ;;  %v3891_v35 = vunpack.i.l.bf16 %v3890_v53 }
 0xfa7   :  { %v3757_v27 = vpack.c.bf16 %v3892_v50, %v3891_v35  ;;  %v4005_v51 = vpop.eup %4004 }
 0xfa8   :  { %v2481_v21 = vmul.f32 %v4005_v51, %v4001_v11 }
 0xfa9   :  { %3759 = vmatprep.subr.msk.bf16.mxu1 %vm4796_vm2, %v3757_v27 }
 0xfab   :  { %v4007_v13 = vpop.eup %4006 }
 0xfac   :  { %v2480_v18 = vmul.f32 %v4007_v13, %v4003_v43 }
 0xfae   :  { %3604 = vmatprep.mubr.msk.f32.mxu1 %vm1201_vm5, %v2480_v18 }
 0xfaf   :  { %3605 = vmatmul.mubr.msk.f32.vlgmr.msra.gmra.mrb[20].mxu1 %vm1201_vm5, %v2481_v21 }
 0xfb0   :  { %3762 = vmatpush3.bf16.xpose.msk.msra.mxu1 %vm4796_vm2, %v3757_v27  ;;  %3611 = vmatprep.mubr.msk.f32.mxu1 %vm1115_vm1, %v2580_v36  ;;  %v3338_v36 = vld [vmem:[%s5187_s4 + $0x1b] ss:$0 sm:$0xff] }
 0xfb7   :  { %3612 = vmatmul.mubr.msk.f32.vlgmr.msra.gmra.mrb[22].mxu1 %vm1115_vm1, %v2582_v2 }
0x1082   :  { %v3606_v46 = vpop.f32.mrb[20].mxu1 }
0x1083   :  { %v2560_v25 = vpop.f32.mrb[21].mxu1 }
0x108a   :  { %v3613_v47 = vpop.f32.mrb[22].mxu1 }
0x108b   :  { %v2667_v16 = vadd.f32 %v3613_v47, %v4932_v15  ;;  %v2661_v63 = vpop.f32.mrb[23].mxu1 }
0x108c   :  { %v2662_v30 = vadd.f32 %v2661_v63, %v4932_v15  ;;  %v4025_v15 = vld [vmem:[%s5186_s3 + $0x10] sm:$0xff] }
0x108d   :  { %v2673_v0 = vsel %vm1201_vm5, %v2667_v16, -inf  ;;  %v3898_v1 = vpack.i.bf16 %v4025_v15, %v4024_v38 }
0x108e   :  { %2674 = vmax.xlane.f32.xlu0 %v2673_v0  ;;  %v2670_v58 = vsel %vm1201_vm5, %v2662_v30, -inf }
0x108f   :  { %2671 = vmax.xlane.f32.xlu1 %v2670_v58 }
0x10a0   :  { %3894 = vrot.lane.b32.xlu1 %v4857_v7, %s4063_s1 }
0x10a4   :  { %1519 = vrot.lane.b32.xlu1 %v4919_v17, %s4064_s0 }
0x10a8   :  { %1728 = vrot.lane.b32.xlu1 %v4928_v10, %s4065_s9 }
0x10ac   :  { %3899 = vrot.lane.b32.xlu1 %v3898_v1, %s4053_s13 }
0x10b0   :  { %1939 = vrot.lane.b32.xlu1 %v4968_v12, %s4066_s15 }
0x10b4   :  { %2361 = vrot.lane.b32.xlu1 %v4996_v42, %s4064_s0 }
0x10b8   :  { %2571 = vrot.lane.b32.xlu1 %v2560_v25, %s4065_s9 }
0x10bc   :  { %2573 = vrot.lane.b32.xlu1 %v3606_v46, %s4065_s9 }
0x111b   :  { %v2675_v7 = vpop.xlane.xlu0 %2674 }
0x111c   :  { %v2677_v17 = vsub.f32 %v2667_v16, %v2675_v7  ;;  %v2672_v10 = vpop.xlane.xlu1 %2671 }
0x111d   :  { %v2676_v22 = vsub.f32 %v2662_v30, %v2672_v10 }
0x111e   :  { %v2680_v56 = vmul.f32 1.442695, %v2677_v17 }
0x111f   :  { %v2678_v60 = vmul.f32 1.442695, %v2676_v22 }
0x1120   :  { %v3895_v3 = vpop.permute.xlu1 %3894 }
0x1121   :  { %4008 = vpow2.f32 %v2678_v60  ;;  %v3897_v49 = vunpack.i.h.bf16 %v3895_v3  ;;  %v3896_v26 = vunpack.i.l.bf16 %v3895_v3 }
0x1122   :  { %4010 = vpow2.f32 %v2680_v56 }
0x1123   :  { %v3763_v12 = vpack.c.bf16 %v3897_v49, %v3896_v26 }
0x1124   :  { %v1520_v41 = vpop.permute.xlu1 %1519 }
0x1125   :  { %1525 = vst.msk [vmem:[#allocation2 + $0x8] sm:$0xff] %vm1523_vm7, %v1520_v41  ;;  %3764 = vmatprep.subr.bf16.mxu0 %v3763_v12 }
0x1126   :  { %3766 = vmatpush3.bf16.msra.mxu0 %v3763_v12 }
0x1128   :  { %v1729_v62 = vpop.permute.xlu1 %1728 }
0x112b   :  { %v4009_v42 = vpop.eup %4008 }
0x112c   :  { %v3900_v6 = vpop.permute.xlu1 %3899  ;;  %v2682_v23 = vsel %vm1201_vm5, %v4009_v42, 0.0  ;;  %v4011_v57 = vpop.eup %4010 }
0x112d   :  { %v3902_v59 = vunpack.i.h.bf16 %v3900_v6  ;;  %v3901_v54 = vunpack.i.l.bf16 %v3900_v6  ;;  %2683 = vadd.xlane.f32.xlu0 %v2682_v23  ;;  %v2685_v9 = vsel %vm1201_vm5, %v4011_v57, 0.0 }
0x112f   :  { %v3767_v48 = vpack.c.bf16 %v3902_v59, %v3901_v54 }
0x1130   :  { %v1940_v37 = vpop.permute.xlu1 %1939 }
0x1131   :  { %2686 = vadd.xlane.f32.xlu0 %v2685_v9  ;;  %3768 = vmatprep.subr.bf16.mxu0 %v3767_v48 }
0x1134   :  { %v2362_v32 = vpop.permute.xlu1 %2361 }
0x1135   :  { %2367 = vst.msk [vmem:[#allocation2 + $0x10] sm:$0xff] %vm1523_vm7, %v2362_v32 }
0x1138   :  { %v2572_v14 = vpop.permute.xlu1 %2571 }
0x1139   :  { %2577 = vst.msk [vmem:[#allocation2 + $0x10] sm:$0xff] %vm1734_vm8, %v2572_v14 }
0x113c   :  { %v2574_v20 = vpop.permute.xlu1 %2573 }
0x1147   :  { %1517 = vrot.lane.b32.xlu0 %v4921_v31, %s4064_s0 }
0x114b   :  { %1730 = vrot.lane.b32.xlu0 %v4926_v29, %s4065_s9  ;;  %s4067_s9 = smov [#allocation3]  }
0x114c   :  { %s3242_s10 = sshll.u32 %s4067_s9, 4  ;;  %s3243_s10 = int_to_ptr.vmem [resolvable:$true] %s3242_s10 }
0x114d   :  { %p4033_p1 = scmp.lt.s32.totalorder %s3243_s10, %s3243_s10 }
0x114f   :  { %1941 = vrot.lane.b32.xlu0 %v4966_v39, %s4066_s15 }
0x1153   :  { %2363 = vrot.lane.b32.xlu0 %v4994_v4, %s4064_s0 }
0x1157   :  { %3904 = vrot.lane.b32.xlu0 %v3903_v55, %s4053_s13  ;;  %v2991_v55 = vld [vmem:[%s5186_s3 + $0x28] sm:$0xff] }
0x11ba   :  { %v2684_v31 = vpop.xlane.xlu0 %2683 }
0x11bb   :  { %4012 = vrcp.f32 %v2684_v31  ;;  %v2992_v31 = vld [vmem:[%s5186_s3 + $0x38] sm:$0xff] }
0x11be   :  { %v2687_v29 = vpop.xlane.xlu0 %2686 }
0x11bf   :  { %4014 = vrcp.f32 %v2687_v29 }
0x11c2   :  { %v1518_v52 = vpop.permute.xlu0 %1517 }
0x11c3   :  { %1524 = vst.msk [vmem:[#allocation2] sm:$0xff] %vm1523_vm7, %v1518_v52  ;;  %v2989_v52 = vld [vmem:[%s5186_s3 + $0x8] sm:$0xff] }
0x11c4   :  { %1735 = vst.msk [vmem:[#allocation2] sm:$0xff] %vm1734_vm8, %v1729_v62 }
0x11c5   :  { %v4013_v39 = vpop.eup %4012  ;;  %1946 = vst.msk [vmem:[#allocation2] sm:$0xff] %vm1945_vm9, %v1940_v37 }
0x11c6   :  { %v1731_v4 = vpop.permute.xlu0 %1730  ;;  %v2690_v33 = vmul.f32 %v4013_v39, %v4009_v42  ;;  %v2990_v39 = vld [vmem:[%s5186_s3 + $0x18] sm:$0xff] }
0x11c7   :  { %1736 = vst.msk [vmem:[#allocation2 + $0x8] sm:$0xff] %vm1734_vm8, %v1731_v4 }
0x11c8   :  { %3618 = vmatprep.mubr.msk.f32.mxu0 %vm1201_vm5, %v2690_v33  ;;  %v3343_v33 = vld [vmem:[%s5187_s4 + $0x3] ss:$0 sm:$0xff] }
0x11c9   :  { %v4015_v28 = vpop.eup %4014 }
0x11ca   :  { %v2691_v11 = vmul.f32 %v4015_v28, %v4011_v57  ;;  %v1942_v40 = vpop.permute.xlu0 %1941  ;;  %v3913_v28 = vpack.i.bf16 %v2992_v31, %v2991_v55 }
0x11cb   :  { %1947 = vst.msk [vmem:[#allocation2 + $0x8] sm:$0xff] %vm1945_vm9, %v1942_v40  ;;  %v3908_v40 = vpack.i.bf16 %v2990_v39, %v2989_v52 }
0x11cc   :  { %3619 = vmatmul.mubr.msk.f32.vlgmr.msra.gmra.mrb[18].mxu0 %vm1201_vm5, %v2691_v11  ;;  %v2789_v43 = vld [vmem:[#allocation2] sm:$0xff] }
0x11cd   :  { %3629 = vmatprep.mubr.msk.f32.mxu0 %vm136_vm0, %v2789_v43  ;;  %3770 = vmatpush3.bf16.msra.mxu0 %v3767_v48  ;;  %v3344_v43 = vld [vmem:[%s5187_s4 + $0x7] ss:$0 sm:$0xff] }
0x11ce   :  { %v2364_v5 = vpop.permute.xlu0 %2363 }
0x11cf   :  { %2368 = vst.msk [vmem:[#allocation2 + $0x18] sm:$0xff] %vm1523_vm7, %v2364_v5 }
0x11d0   :  { %2578 = vst.msk [vmem:[#allocation2 + $0x18] sm:$0xff] %vm1734_vm8, %v2574_v20 }
0x11d2   :  { %v3905_v24 = vpop.permute.xlu0 %3904  ;;  %v2790_v27 = vld [vmem:[#allocation2 + $0x8] sm:$0xff] }
0x11d3   :  { %v3907_v53 = vunpack.i.h.bf16 %v3905_v24  ;;  %v3906_v50 = vunpack.i.l.bf16 %v3905_v24 }
0x11d5   :  { %v3771_v35 = vpack.c.bf16 %v3907_v53, %v3906_v50 }
0x11d7   :  { %3772 = vmatprep.subr.bf16.mxu0 %v3771_v35 }
0x11d8   :  { %3774 = vmatpush3.bf16.msra.mxu0 %v3771_v35 }
0x11db   :  { %3630 = vmatmul.mubr.msk.f32.vlgmr.msra.gmra.mrb[20].mxu0 %vm136_vm0, %v2790_v27 }
0x129f   :  { %v3620_v51 = vpop.f32.mrb[18].mxu0 }
0x12a0   :  { %2783 = vrot.lane.b32.xlu1 %v3620_v51, %s4066_s15  ;;  %v2770_v13 = vpop.f32.mrb[19].mxu0 }
0x12a1   :  { %2781 = vrot.lane.b32.xlu0 %v2770_v13, %s4066_s15 }
0x12ae   :  { %v3631_v18 = vpop.f32.mrb[20].mxu0 }
0x12af   :  { %v2896_v21 = vpop.f32.mrb[21].mxu0  ;;  %v2902_v46 = vadd.f32 %v3631_v18, %v3338_v36 }
0x12b0   :  { %v2897_v2 = vadd.f32 %v3338_v36, %v2896_v21 }
0x12b1   :  { %v5083_v47 = vadd.f32 %v2902_v46, %v4704_v19 }
0x12b2   :  { %v5080_v25 = vadd.f32 %v2897_v2, %v4707_v61 }
0x12b3   :  { %v2924_v63 = vsel %vm136_vm0, %v5083_v47, 0.0 }
0x12b4   :  { %v2921_v16 = vsel %vm136_vm0, %v5080_v25, 0.0 }
0x12c0   :  { %2922 = vadd.xlane.f32.xlu0 %v2921_v16 }
0x12c4   :  { %2925 = vadd.xlane.f32.xlu1 %v2924_v63 }
0x1312   :  { %v2784_v30 = vpop.permute.xlu1 %2783 }
0x1313   :  { %2788 = vst.msk [vmem:[#allocation2 + $0x18] sm:$0xff] %vm1945_vm9, %v2784_v30  ;;  %v2782_v0 = vpop.permute.xlu0 %2781 }
0x1314   :  { %2787 = vst.msk [vmem:[#allocation2 + $0x10] sm:$0xff] %vm1945_vm9, %v2782_v0 }
0x131a   :  { %v2792_v61 = vld [vmem:[#allocation2 + $0x18] sm:$0xff] }
0x131b   :  { %v2791_v58 = vld [vmem:[#allocation2 + $0x10] sm:$0xff] }
0x131c   :  { %3632 = vmatprep.mubr.msk.f32.mxu0 %vm136_vm0, %v2791_v58 }
0x131d   :  { %3633 = vmatmul.mubr.msk.f32.gmra.mrb[22].mxu0 %vm136_vm0, %v2792_v61 }
0x134d   :  { %v2923_v17 = vpop.xlane.xlu0 %2922 }
0x134e   :  { %v2933_v56 = vmul.f32 0.03125, %v2923_v17 }
0x1350   :  { %v2937_v26 = vsub.f32 %v5080_v25, %v2933_v56 }
0x1351   :  { %v2926_v19 = vpop.xlane.xlu1 %2925 }
0x1352   :  { %v2934_v38 = vmul.f32 0.03125, %v2926_v19  ;;  %v2941_v42 = vmul.f32 %v2937_v26, %v2937_v26 }
0x1354   :  { %v5094_v15 = vsub.f32 %v5083_v47, %v2934_v38  ;;  %v2945_v6 = vsel %vm136_vm0, %v2941_v42, 0.0 }
0x1356   :  { %v2942_v1 = vmul.f32 %v5094_v15, %v5094_v15 }
0x1358   :  { %v2948_v7 = vsel %vm136_vm0, %v2942_v1, 0.0 }
0x1359   :  { %2949 = vadd.xlane.f32.xlu1 %v2948_v7 }
0x13e6   :  { %v2950_v20 = vpop.xlane.xlu1 %2949 }
0x13e7   :  { %v2958_v24 = vmul.f32 0.03125, %v2950_v20 }
0x13e9   :  { %v2962_v53 = vadd.f32 1e-05, %v2958_v24 }
0x13f0   :  { %v3634_v10 = vpop.f32.mrb[22].mxu0 }
0x13f1   :  { %v2906_v22 = vpop.f32.mrb[23].mxu0  ;;  %v2912_v60 = vadd.f32 %v3634_v10, %v3338_v36 }
0x13f2   :  { %v2907_v3 = vadd.f32 %v3338_v36, %v2906_v22 }
0x13f3   :  { %v5104_v12 = vadd.f32 %v2912_v60, %v4716_v34 }
0x13f4   :  { %v5100_v49 = vadd.f32 %v2907_v3, %v4720_v8 }
0x13f5   :  { %v2930_v62 = vsel %vm136_vm0, %v5104_v12, 0.0 }
0x13f6   :  { %v2927_v41 = vsel %vm136_vm0, %v5100_v49, 0.0 }
0x13f7   :  { %2928 = vadd.xlane.f32.xlu0 %v2927_v41 }
0x13fb   :  { %2931 = vadd.xlane.f32.xlu0 %v2930_v62 }
0x13ff   :  { %2946 = vadd.xlane.f32.xlu0 %v2945_v6 }
0x1484   :  { %v2929_v23 = vpop.xlane.xlu0 %2928 }
0x1485   :  { %v2935_v8 = vmul.f32 0.03125, %v2929_v23 }
0x1487   :  { %v5112_v57 = vsub.f32 %v5100_v49, %v2935_v8 }
0x1488   :  { %v2932_v59 = vpop.xlane.xlu0 %2931 }
0x1489   :  { %v2936_v34 = vmul.f32 0.03125, %v2932_v59  ;;  %v2943_v54 = vmul.f32 %v5112_v57, %v5112_v57 }
0x148b   :  { %v5117_v48 = vsub.f32 %v5104_v12, %v2936_v34  ;;  %v2951_v37 = vsel %vm136_vm0, %v2943_v54, 0.0 }
0x148c   :  { %2952 = vadd.xlane.f32.xlu0 %v2951_v37  ;;  %v2947_v9 = vpop.xlane.xlu0 %2946 }
0x148d   :  { %v2957_v32 = vmul.f32 0.03125, %v2947_v9  ;;  %v2944_v14 = vmul.f32 %v5117_v48, %v5117_v48 }
0x148f   :  { %v2961_v44 = vadd.f32 1e-05, %v2957_v32  ;;  %v2954_v45 = vsel %vm136_vm0, %v2944_v14, 0.0 }
0x1490   :  { %2955 = vadd.xlane.f32.xlu1 %v2954_v45 }
0x1491   :  { %4016 = vrsqrt.f32 %v2961_v44 }
0x1492   :  { %4018 = vrsqrt.f32 %v2962_v53 }
0x149b   :  { %v4017_v29 = vpop.eup %4016 }
0x149c   :  { %v2969_v4 = vmul.f32 %v4017_v29, %v2937_v26  ;;  %v4019_v51 = vpop.eup %4018  ;;  %v3350_v29 = vld [vmem:[%s5187_s4 + $0x1d] ss:$0 sm:$0xff] }
0x149d   :  { %v2970_v46 = vmul.f32 %v4019_v51, %v5094_v15 }
0x149e   :  { %v2977_v11 = vmul.f32 %v3343_v33, %v2969_v4 }
0x149f   :  { %v2978_v19 = vmul.f32 %v3343_v33, %v2970_v46 }
0x14a0   :  { %v2985_v5 = vadd.f32 %v3344_v43, %v2977_v11 }
0x14a1   :  { %3914 = vrot.lane.b32.xlu1 %v3913_v28, %s4058_s28  ;;  %v2986_v7 = vadd.f32 %v3344_v43, %v2978_v19 }
0x14a2   :  { %3643 = vmatprep.mubr.msk.f32.mxu1 %vm136_vm0, %v2985_v5  ;;  %3909 = vrot.lane.b32.xlu0 %v3908_v40, %s4058_s28 }
0x14a5   :  { %3919 = vrot.lane.b32.xlu1 %v3908_v40, %s4053_s13 }
0x14a9   :  { %3924 = vrot.lane.b32.xlu1 %v3913_v28, %s4053_s13 }
0x1519   :  { %v2953_v50 = vpop.xlane.xlu0 %2952 }
0x151a   :  { %v2959_v35 = vmul.f32 0.03125, %v2953_v50 }
0x151c   :  { %v2963_v27 = vadd.f32 1e-05, %v2959_v35 }
0x151d   :  { %v2956_v13 = vpop.xlane.xlu1 %2955  ;;  %v3910_v18 = vpop.permute.xlu0 %3909 }
0x151e   :  { %4020 = vrsqrt.f32 %v2963_v27  ;;  %v2960_v21 = vmul.f32 0.03125, %v2956_v13  ;;  %v3912_v36 = vunpack.i.h.bf16 %v3910_v18  ;;  %v3911_v2 = vunpack.i.l.bf16 %v3910_v18 }
0x1520   :  { %v2964_v16 = vadd.f32 1e-05, %v2960_v21  ;;  %v3775_v63 = vpack.c.bf16 %v3912_v36, %v3911_v2 }
0x1521   :  { %v3915_v30 = vpop.permute.xlu1 %3914 }
0x1522   :  { %4022 = vrsqrt.f32 %v2964_v16  ;;  %v3917_v0 = vunpack.i.h.bf16 %v3915_v30  ;;  %v3916_v58 = vunpack.i.l.bf16 %v3915_v30  ;;  %3776 = vmatprep.subr.bf16.mxu1 %v3775_v63 }
0x1523   :  { %3778 = vmatpush3.bf16.msra.mxu1 %v3775_v63 }
0x1524   :  { %v3779_v61 = vpack.c.bf16 %v3917_v0, %v3916_v58 }
0x1525   :  { %v3920_v38 = vpop.permute.xlu1 %3919 }
0x1526   :  { %3780 = vmatprep.subr.bf16.mxu1 %v3779_v61  ;;  %v3922_v17 = vunpack.i.h.bf16 %v3920_v38  ;;  %v3921_v10 = vunpack.i.l.bf16 %v3920_v38 }
0x1527   :  { %3782 = vmatpush3.bf16.msra.mxu1 %v3779_v61 }
0x1528   :  { %v4021_v1 = vpop.eup %4020  ;;  %v3783_v15 = vpack.c.bf16 %v3922_v17, %v3921_v10 }
0x1529   :  { %v2971_v22 = vmul.f32 %v4021_v1, %v5112_v57  ;;  %v3925_v60 = vpop.permute.xlu1 %3924  ;;  %v3345_v57 = vld [vmem:[%s5187_s4 + $0x1c] ss:$0 sm:$0xff]  ;;  %s4028_s4 = scalar_lea.vmem %s3243_s10, 512 }
0x152a   :  { %3644 = vmatmul.mubr.msk.f32.vlgmr.msra.gmra.mrb[24].mxu1 %vm136_vm0, %v2986_v7  ;;  %v3927_v26 = vunpack.i.h.bf16 %v3925_v60  ;;  %v3926_v41 = vunpack.i.l.bf16 %v3925_v60  ;;  %3784 = vmatprep.subr.bf16.mxu0 %v3783_v15  ;;  %p4029_p0 = scmp.ne.s32.totalorder %s3243_s10, %s4028_s4  ;;  %p4034_p2 = scmp.lt.s32.totalorder %s4028_s4, %s4028_s4 }
0x152b   :  { %v2979_v56 = vmul.f32 %v3343_v33, %v2971_v22  ;;  %3786 = vmatpush3.bf16.msra.mxu0 %v3783_v15 }
0x152c   :  { %v4023_v3 = vpop.eup %4022  ;;  %v3787_v6 = vpack.c.bf16 %v3927_v26, %v3926_v41  ;;  %p4035_p3 = por %p4034_p2, %p4033_p1 }
0x152d   :  { %v2987_v62 = vadd.f32 %v3344_v43, %v2979_v56  ;;  %v2972_v42 = vmul.f32 %v4023_v3, %v5117_v48 }
0x152e   :  { %3788 = vmatprep.subr.bf16.mxu0 %v3787_v6  ;;  %p4036_p4 = pnand %p4035_p3, %p4029_p0 }
0x152f   :  { %3646 = vmatprep.mubr.msk.f32.mxu1 %vm136_vm0, %v2987_v62  ;;  %v2980_v23 = vmul.f32 %v3343_v33, %v2972_v42  ;;  %3790 = vmatpush3.bf16.msra.mxu0 %v3787_v6 }
0x1531   :  { %v2988_v8 = vadd.f32 %v3344_v43, %v2980_v23 }
0x1533   :  { %3647 = vmatmul.mubr.msk.f32.gmra.mrb[26].mxu1 %vm136_vm0, %v2988_v8 }
0x15fd   :  { %v3645_v59 = vpop.f32.mrb[24].mxu1 }
0x15fe   :  { %v3098_v34 = vadd.f32 %v3645_v59, %v3345_v57  ;;  %v3092_v54 = vpop.f32.mrb[25].mxu1 }
0x15ff   :  { %v3093_v37 = vadd.f32 %v3345_v57, %v3092_v54 }
0x1600   :  { %v3112_v48 = vmax.f32 %v3098_v34, 0.0 }
0x1601   :  { %v3111_v9 = vmax.f32 %v3093_v37, 0.0 }
0x1603   :  { %3657 = vmatprep.mubr.msk.f32.mxu0 %vm136_vm0, %v3111_v9 }
0x1604   :  { %3658 = vmatmul.mubr.msk.f32.vlgmr.msra.gmra.mrb[24].mxu0 %vm136_vm0, %v3112_v48 }
0x1606   :  { %v3648_v32 = vpop.f32.mrb[26].mxu1 }
0x1607   :  { %v3108_v14 = vadd.f32 %v3648_v32, %v3345_v57  ;;  %v3102_v44 = vpop.f32.mrb[27].mxu1 }
0x1608   :  { %v3103_v45 = vadd.f32 %v3345_v57, %v3102_v44 }
0x1609   :  { %v3114_v31 = vmax.f32 %v3108_v14, 0.0 }
0x160a   :  { %v3113_v55 = vmax.f32 %v3103_v45, 0.0 }
0x160c   :  { %3660 = vmatprep.mubr.msk.f32.mxu0 %vm136_vm0, %v3113_v55 }
0x160d   :  { %3661 = vmatmul.mubr.msk.f32.gmra.mrb[26].mxu0 %vm136_vm0, %v3114_v31 }
0x16d7   :  { %v3659_v52 = vpop.f32.mrb[24].mxu0 }
0x16d8   :  { %v3216_v39 = vadd.f32 %v3659_v52, %v3350_v29  ;;  %v3210_v4 = vpop.f32.mrb[25].mxu0 }
0x16d9   :  { %v3211_v33 = vadd.f32 %v3350_v29, %v3210_v4 }
0x16da   :  { %v3230_v28 = vadd.f32 %v3216_v39, %v5083_v47 }
0x16db   :  { %v3229_v11 = vadd.f32 %v3211_v33, %v5080_v25 }
0x16dc   :  { %3234 = vst.msk [vmem:[#allocation3 + $0x8] sm:$0xff] %vm136_vm0, %v3230_v28 }
0x16dd   :  { %3233 = vst.msk [vmem:[#allocation3] sm:$0xff] %vm136_vm0, %v3229_v11 }
0x16e0   :  { %v3662_v40 = vpop.f32.mrb[26].mxu0 }
0x16e1   :  { %v3226_v43 = vadd.f32 %v3662_v40, %v3350_v29  ;;  %v3220_v5 = vpop.f32.mrb[27].mxu0 }
0x16e2   :  { %v3221_v20 = vadd.f32 %v3350_v29, %v3220_v5 }
0x16e3   :  { %v3232_v24 = vadd.f32 %v3226_v43, %v5104_v12 }
0x16e4   :  { %v3231_v53 = vadd.f32 %v3221_v20, %v5100_v49 }
0x16e5   :  { %3236 = vst.msk [vmem:[#allocation3 + $0x18] sm:$0xff] %vm136_vm0, %v3232_v24 }
0x16e6   :  { %3235 = vst.msk [vmem:[#allocation3 + $0x10] sm:$0xff] %vm136_vm0, %v3231_v53 }
0x16e7   :  { %4039 = shalt.err (!%p4036_p4)
}
0x16e8   :  { %s4040_s14 = scalar_lea.hbm %s5188_s5, 512 }
0x16e9   :  { %p4041_p5 = scmp.ne.s32.totalorder %s5188_s5, %s4040_s14  ;;  %p4044_p6 = scmp.lt.u32.totalorder %s4040_s14, %s5188_s5 }
0x16eb   :  { %p4046_p7 = pnand %p4044_p6, %p4041_p5 }
0x16ed   :  { %4049 = shalt.err (!%p4046_p7)
}
0x16ee   :  { %s4068_s19 = smov 128  }
0x16ef   :  { %3248 = dma.vmem_to_hbm [thread:$0]  %s3243_s10, 512, %s5188_s5, [#allocation4], %s4068_s19, %s4068_s19, %s4064_s0  }
0x16f0   :  { %4050 = dma.done.wait [#allocation4], 512  }
0x16f1   :  { %4051 = vsyncadd [#allocation4], 4294966784 }
0x16f2   :  { %3252 = vsyncpa [#allocation4], 1 }

</bundles_post_ra>
